<compile_context>
chip_gen: v6e
topology: v6e:2x2x1
jax: 0.10.0
libtpu: 0.0.40
codegen_flags: <defaults>
</compile_context>

<pallas_src>
import numpy as np
import jax
import jax.numpy as jnp
from jax import lax
from jax.experimental import pallas as pl
from jax.experimental.pallas import tpu as pltpu

K = 32          # embedding dim
HEADS = 4       # number of heads
S = K // HEADS  # head dim
HIDDEN = 4      # ff hidden multiplier
EPS = 1e-5      # nn.LayerNorm default eps

# 128-lane-aligned column offsets inside the packed weight slab (units: lanes)
SEG_QKV1 = 0      # [wq1*s | wk1*s | wv1]   (3K = 96 cols)
SEG_WU1 = 128     # wu1                     (K cols)
SEG_WQ2 = 256     # wq2*s                   (K cols)
SEG_KV2 = 384     # [wk2*s | wv2]           (2K = 64 cols)
SEG_WU2 = 512     # wu2                     (K cols)
SEG_WF1 = 640     # wf1                     (4K = 128 cols)
W1_COLS = 768


def _layernorm(z, g, b):
    mu = jnp.mean(z, axis=-1, keepdims=True)
    var = jnp.mean((z - mu) ** 2, axis=-1, keepdims=True)
    return (z - mu) * lax.rsqrt(var + EPS) * g + b


def _softmax_last(x):
    m = jnp.max(x, axis=-1, keepdims=True)
    e = jnp.exp(x - m)
    return e / jnp.sum(e, axis=-1, keepdims=True)


def _heads_attend(q, kk, vv, mask):
    """q:(rq,K) kk,vv:(rk,K) in f32; additive mask:(rq,rk).
    Per-head attention; head outputs stay in registers and are concatenated."""
    q = q.astype(jnp.bfloat16)
    kk = kk.astype(jnp.bfloat16)
    vv = vv.astype(jnp.bfloat16)
    outs = []
    for hi in range(HEADS):
        sl = slice(hi * S, (hi + 1) * S)
        dot = lax.dot_general(q[:, sl], kk[:, sl],
                              (((1,), (1,)), ((), ())),
                              preferred_element_type=jnp.float32)   # (rq, rk)
        attn = _softmax_last(dot + mask)
        outs.append(jnp.dot(attn.astype(jnp.bfloat16), vv[:, sl],
                            preferred_element_type=jnp.float32))    # (rq, S)
    return jnp.concatenate(outs, axis=-1)                           # (rq, K)


def decoder_block_kernel(x_ref, ctx_ref, mself_ref, mcross_ref,
                         w1_ref, w2_ref, vk_ref, vh_ref, out_ref):
    x = x_ref[...]                              # (B*T, K)  f32
    x_bf = x.astype(jnp.bfloat16)
    ctx_bf = ctx_ref[...].astype(jnp.bfloat16)  # (B*Tc, K)

    mask_self = mself_ref[...]                  # (B*T, B*T)   additive
    mask_cross = mcross_ref[...]                # (B*T, B*Tc)  additive

    # --- biases + LayerNorm gamma/beta slab ---
    vk = vk_ref[...]                            # (9, K) f32
    bu1, g1, be1 = vk[0:1], vk[1:2], vk[2:3]
    bu2, g2, be2 = vk[3:4], vk[4:5], vk[5:6]
    bf2, g3, be3 = vk[6:7], vk[7:8], vk[8:9]
    bf1 = vh_ref[...]                           # (1, HIDDEN*K) f32

    # 1) masked self-attention (fused QKV projection; scale folded into weights)
    qkv = jnp.dot(x_bf, w1_ref[:, SEG_QKV1:SEG_QKV1 + 3 * K],
                  preferred_element_type=jnp.float32)                 # (BT, 3K)
    o1 = _heads_attend(qkv[:, 0:K], qkv[:, K:2 * K], qkv[:, 2 * K:3 * K],
                       mask_self)
    sa = jnp.dot(o1.astype(jnp.bfloat16), w1_ref[:, SEG_WU1:SEG_WU1 + K],
                 preferred_element_type=jnp.float32) + bu1
    x1 = _layernorm(x + sa, g1, be1)

    # 2) cross-attention (Q from x1, fused K|V projection of the context)
    x1_bf = x1.astype(jnp.bfloat16)
    q2 = jnp.dot(x1_bf, w1_ref[:, SEG_WQ2:SEG_WQ2 + K],
                 preferred_element_type=jnp.float32)
    kv2 = jnp.dot(ctx_bf, w1_ref[:, SEG_KV2:SEG_KV2 + 2 * K],
                  preferred_element_type=jnp.float32)
    o2 = _heads_attend(q2, kv2[:, 0:K], kv2[:, K:2 * K], mask_cross)
    ca = jnp.dot(o2.astype(jnp.bfloat16), w1_ref[:, SEG_WU2:SEG_WU2 + K],
                 preferred_element_type=jnp.float32) + bu2
    x2 = _layernorm(x1 + ca, g2, be2)

    # 3) feed-forward (Linear -> ReLU -> Linear) + residual + LayerNorm
    h = jnp.dot(x2.astype(jnp.bfloat16), w1_ref[:, SEG_WF1:SEG_WF1 + HIDDEN * K],
                preferred_element_type=jnp.float32) + bf1
    h = jnp.maximum(h, 0.0)
    ff = jnp.dot(h.astype(jnp.bfloat16), w2_ref[...],
                 preferred_element_type=jnp.float32) + bf2
    x3 = _layernorm(x2 + ff, g3, be3)

    out_ref[...] = x3.astype(out_ref.dtype)


def decoder_block(x, context, packed):
    """x: (b, t, K), context: (b, tc, K). packed = (w1, w2, vk, vh)."""
    b, t, k = x.shape
    _, tc, _ = context.shape
    assert k == K
    w1, w2, vk, vh = packed

    bt, btc = b * t, b * tc
    x2d = x.reshape(bt, k)
    ctx2d = context.reshape(btc, k)

    # Static additive masks: block-diagonal over the folded batch, plus causal
    # structure inside each self-attention block (built host-side, tiny).
    rb = np.arange(bt) // t
    rp = np.arange(bt) % t
    self_ok = (rb[:, None] == rb[None, :]) & (rp[None, :] <= rp[:, None])
    mask_self = jnp.asarray(np.where(self_ok, 0.0, -1e30), dtype=jnp.float32)
    cb = np.arange(btc) // tc
    cross_ok = rb[:, None] == cb[None, :]
    mask_cross = jnp.asarray(np.where(cross_ok, 0.0, -1e30), dtype=jnp.float32)

    def full2(shape):
        return pl.BlockSpec(shape, lambda i: (0, 0))

    out2d = pl.pallas_call(
        decoder_block_kernel,
        out_shape=jax.ShapeDtypeStruct((bt, k), x.dtype),
        grid=(1,),                                  # single fat step (overhead-bound regime)
        in_specs=[
            full2(x2d.shape), full2(ctx2d.shape),
            full2(mask_self.shape), full2(mask_cross.shape),
            full2(w1.shape), full2(w2.shape), full2(vk.shape), full2(vh.shape),
        ],
        out_specs=pl.BlockSpec((bt, k), lambda i: (0, 0)),
        compiler_params=pltpu.CompilerParams(
            dimension_semantics=("arbitrary",)),
    )(x2d, ctx2d, mask_self, mask_cross, w1, w2, vk, vh)

    return out2d.reshape(b, t, k)


def init_params(key):
    """Deterministic parameter init. Weights stored as (in, out)."""
    keys = jax.random.split(key, 16)
    it = iter(keys)

    def w(shape, scale=0.1):
        return (scale * jax.random.normal(next(it), shape)).astype(jnp.float32)

    ones = jnp.ones((K,), jnp.float32)
    zeros = jnp.zeros((K,), jnp.float32)
    p = {
        # masked self-attention
        "wq1": w((K, K)), "wk1": w((K, K)), "wv1": w((K, K)),
        "wu1": w((K, K)), "bu1": w((K,)),
        "g1": ones, "be1": zeros,
        # cross-attention
        "wq2": w((K, K)), "wk2": w((K, K)), "wv2": w((K, K)),
        "wu2": w((K, K)), "bu2": w((K,)),
        "g2": ones, "be2": zeros,
        # feed-forward
        "wf1": w((K, HIDDEN * K)), "bf1": w((HIDDEN * K,)),
        "wf2": w((HIDDEN * K, K)), "bf2": w((K,)),
        "g3": ones, "be3": zeros,
    }
    return p


def pack_params(p):
    """Pack params into 4 slabs: bf16 weight slabs with 128-lane-aligned
    segments (scale folded into Q/K weights), f32 bias/LayerNorm slabs."""
    scale = 1.0 / (K ** 0.25)      # reference scales q and k each by e**-0.25
    w1 = jnp.zeros((K, W1_COLS), jnp.float32)
    w1 = w1.at[:, SEG_QKV1:SEG_QKV1 + K].set(p["wq1"] * scale)
    w1 = w1.at[:, SEG_QKV1 + K:SEG_QKV1 + 2 * K].set(p["wk1"] * scale)
    w1 = w1.at[:, SEG_QKV1 + 2 * K:SEG_QKV1 + 3 * K].set(p["wv1"])
    w1 = w1.at[:, SEG_WU1:SEG_WU1 + K].set(p["wu1"])
    w1 = w1.at[:, SEG_WQ2:SEG_WQ2 + K].set(p["wq2"] * scale)
    w1 = w1.at[:, SEG_KV2:SEG_KV2 + K].set(p["wk2"] * scale)
    w1 = w1.at[:, SEG_KV2 + K:SEG_KV2 + 2 * K].set(p["wv2"])
    w1 = w1.at[:, SEG_WU2:SEG_WU2 + K].set(p["wu2"])
    w1 = w1.at[:, SEG_WF1:SEG_WF1 + HIDDEN * K].set(p["wf1"])
    w1 = w1.astype(jnp.bfloat16)                                      # (K, 768)
    w2 = p["wf2"].astype(jnp.bfloat16)                                # (4K, K)
    vk = jnp.stack([p["bu1"], p["g1"], p["be1"],
                    p["bu2"], p["g2"], p["be2"],
                    p["bf2"], p["g3"], p["be3"]], axis=0)             # (9, K) f32
    vh = p["bf1"].reshape(1, HIDDEN * K)                              # (1, 4K) f32
    return w1, w2, vk, vh


if __name__ == "__main__":
    key = jax.random.PRNGKey(0)
    k_x, k_ctx, k_p = jax.random.split(key, 3)

    B, T, T_CTX = 2, 8, 12
    x = jax.random.normal(k_x, (B, T, K), dtype=jnp.float32)
    context = jax.random.normal(k_ctx, (B, T_CTX, K), dtype=jnp.float32)
    packed = pack_params(init_params(k_p))

    out = decoder_block(x, context, packed)
    out = jax.block_until_ready(out)
    assert out.shape == (B, T, K)
    assert bool(jnp.all(jnp.isfinite(out)))
    print("KERNEL_OK")
</pallas_src>

<mosaic_0001>
module attributes {stable_mosaic.version = 11 : i64} {
  func.func @decoder_block_kernel(%arg0: i32, %arg1: memref<16x32xf32, #tpu.memory_space<vmem>>, %arg2: memref<24x32xf32, #tpu.memory_space<vmem>>, %arg3: memref<16x16xf32, #tpu.memory_space<vmem>>, %arg4: memref<16x24xf32, #tpu.memory_space<vmem>>, %arg5: memref<32x768xbf16, #tpu.memory_space<vmem>>, %arg6: memref<128x32xbf16, #tpu.memory_space<vmem>>, %arg7: memref<9x32xf32, #tpu.memory_space<vmem>>, %arg8: memref<1x128xf32, #tpu.memory_space<vmem>>, %arg9: memref<16x32xf32, #tpu.memory_space<vmem>>) attributes {dimension_semantics = [#tpu.dimension_semantics<arbitrary>], iteration_bounds = array<i64: 1>, scalar_prefetch = 0 : i64, scratch_operands = 0 : i64, tpu.core_type = #tpu.core_type<tc>, window_params = [{pipeline_mode = #tpu.pipeline_mode<synchronous>, transform_indices = @transform_0, window_bounds = array<i64: 16, 32>}, {pipeline_mode = #tpu.pipeline_mode<synchronous>, transform_indices = @transform_1, window_bounds = array<i64: 24, 32>}, {pipeline_mode = #tpu.pipeline_mode<synchronous>, transform_indices = @transform_2, window_bounds = array<i64: 16, 16>}, {pipeline_mode = #tpu.pipeline_mode<synchronous>, transform_indices = @transform_3, window_bounds = array<i64: 16, 24>}, {pipeline_mode = #tpu.pipeline_mode<synchronous>, transform_indices = @transform_4, window_bounds = array<i64: 32, 768>}, {pipeline_mode = #tpu.pipeline_mode<synchronous>, transform_indices = @transform_5, window_bounds = array<i64: 128, 32>}, {pipeline_mode = #tpu.pipeline_mode<synchronous>, transform_indices = @transform_6, window_bounds = array<i64: 9, 32>}, {pipeline_mode = #tpu.pipeline_mode<synchronous>, transform_indices = @transform_7, window_bounds = array<i64: 1, 128>}, {pipeline_mode = #tpu.pipeline_mode<synchronous>, transform_indices = @transform_8, window_bounds = array<i64: 16, 32>}]} {
    %c0 = arith.constant 0 : index
    %c0_0 = arith.constant 0 : index
    %0 = vector.load %arg1[%c0, %c0_0] : memref<16x32xf32, #tpu.memory_space<vmem>>, vector<16x32xf32>
    %1 = arith.truncf %0 : vector<16x32xf32> to vector<16x32xbf16>
    %c0_1 = arith.constant 0 : index
    %c0_2 = arith.constant 0 : index
    %2 = vector.load %arg2[%c0_1, %c0_2] : memref<24x32xf32, #tpu.memory_space<vmem>>, vector<24x32xf32>
    %3 = arith.truncf %2 : vector<24x32xf32> to vector<24x32xbf16>
    %c0_3 = arith.constant 0 : index
    %c0_4 = arith.constant 0 : index
    %4 = vector.load %arg3[%c0_3, %c0_4] : memref<16x16xf32, #tpu.memory_space<vmem>>, vector<16x16xf32>
    %c0_5 = arith.constant 0 : index
    %c0_6 = arith.constant 0 : index
    %5 = vector.load %arg4[%c0_5, %c0_6] : memref<16x24xf32, #tpu.memory_space<vmem>>, vector<16x24xf32>
    %c0_7 = arith.constant 0 : index
    %c0_8 = arith.constant 0 : index
    %6 = vector.load %arg7[%c0_7, %c0_8] : memref<9x32xf32, #tpu.memory_space<vmem>>, vector<9x32xf32>
    %7 = vector.extract_strided_slice %6 {offsets = [0, 0], sizes = [1, 32], strides = [1, 1]} : vector<9x32xf32> to vector<1x32xf32>
    %8 = vector.extract_strided_slice %6 {offsets = [1, 0], sizes = [1, 32], strides = [1, 1]} : vector<9x32xf32> to vector<1x32xf32>
    %9 = vector.extract_strided_slice %6 {offsets = [2, 0], sizes = [1, 32], strides = [1, 1]} : vector<9x32xf32> to vector<1x32xf32>
    %10 = vector.extract_strided_slice %6 {offsets = [3, 0], sizes = [1, 32], strides = [1, 1]} : vector<9x32xf32> to vector<1x32xf32>
    %11 = vector.extract_strided_slice %6 {offsets = [4, 0], sizes = [1, 32], strides = [1, 1]} : vector<9x32xf32> to vector<1x32xf32>
    %12 = vector.extract_strided_slice %6 {offsets = [5, 0], sizes = [1, 32], strides = [1, 1]} : vector<9x32xf32> to vector<1x32xf32>
    %13 = vector.extract_strided_slice %6 {offsets = [6, 0], sizes = [1, 32], strides = [1, 1]} : vector<9x32xf32> to vector<1x32xf32>
    %14 = vector.extract_strided_slice %6 {offsets = [7, 0], sizes = [1, 32], strides = [1, 1]} : vector<9x32xf32> to vector<1x32xf32>
    %15 = vector.extract_strided_slice %6 {offsets = [8, 0], sizes = [1, 32], strides = [1, 1]} : vector<9x32xf32> to vector<1x32xf32>
    %c0_9 = arith.constant 0 : index
    %c0_10 = arith.constant 0 : index
    %16 = vector.load %arg8[%c0_9, %c0_10] : memref<1x128xf32, #tpu.memory_space<vmem>>, vector<1x128xf32>
    %c0_11 = arith.constant 0 : index
    %c0_12 = arith.constant 0 : index
    %17 = vector.load %arg5[%c0_11, %c0_12] : memref<32x768xbf16, #tpu.memory_space<vmem>>, vector<32x96xbf16>
    %cst = arith.constant dense<0.000000e+00> : vector<16x96xf32>
    %18 = tpu.matmul %1, %17, %cst {dimension_numbers = #tpu.dot_dimension_numbers<[1], [0], [0], [1], [0, 0, 1, 1], [], []>} : vector<16x32xbf16>, vector<32x96xbf16>, vector<16x96xf32> -> vector<16x96xf32>
    %19 = vector.extract_strided_slice %18 {offsets = [0, 0], sizes = [16, 32], strides = [1, 1]} : vector<16x96xf32> to vector<16x32xf32>
    %20 = vector.extract_strided_slice %18 {offsets = [0, 32], sizes = [16, 32], strides = [1, 1]} : vector<16x96xf32> to vector<16x32xf32>
    %21 = vector.extract_strided_slice %18 {offsets = [0, 64], sizes = [16, 32], strides = [1, 1]} : vector<16x96xf32> to vector<16x32xf32>
    %22 = arith.truncf %19 : vector<16x32xf32> to vector<16x32xbf16>
    %23 = arith.truncf %20 : vector<16x32xf32> to vector<16x32xbf16>
    %24 = arith.truncf %21 : vector<16x32xf32> to vector<16x32xbf16>
    %25 = vector.extract_strided_slice %22 {offsets = [0, 0], sizes = [16, 8], strides = [1, 1]} : vector<16x32xbf16> to vector<16x8xbf16>
    %26 = vector.extract_strided_slice %23 {offsets = [0, 0], sizes = [16, 8], strides = [1, 1]} : vector<16x32xbf16> to vector<16x8xbf16>
    %cst_13 = arith.constant dense<0.000000e+00> : vector<16x16xf32>
    %27 = tpu.matmul %25, %26, %cst_13 {dimension_numbers = #tpu.dot_dimension_numbers<[1], [1], [0], [0], [0, 0, 1, 0], [], []>} : vector<16x8xbf16>, vector<16x8xbf16>, vector<16x16xf32> -> vector<16x16xf32>
    %28 = arith.addf %27, %4 : vector<16x16xf32>
    %cst_14 = arith.constant dense<0xFF800000> : vector<16xf32>
    %29 = vector.multi_reduction <maximumf>, %28, %cst_14 [1] : vector<16x16xf32> to vector<16xf32>
    %30 = vector.shape_cast %29 : vector<16xf32> to vector<16x1xf32>
    %31 = vector.broadcast %30 : vector<16x1xf32> to vector<16x16xf32>
    %32 = arith.subf %28, %31 : vector<16x16xf32>
    %33 = math.exp %32 : vector<16x16xf32>
    %cst_15 = arith.constant dense<0.000000e+00> : vector<16xf32>
    %34 = vector.multi_reduction <add>, %33, %cst_15 [1] : vector<16x16xf32> to vector<16xf32>
    %35 = vector.shape_cast %34 : vector<16xf32> to vector<16x1xf32>
    %36 = vector.broadcast %35 : vector<16x1xf32> to vector<16x16xf32>
    %37 = arith.divf %33, %36 : vector<16x16xf32>
    %38 = arith.truncf %37 : vector<16x16xf32> to vector<16x16xbf16>
    %39 = vector.extract_strided_slice %24 {offsets = [0, 0], sizes = [16, 8], strides = [1, 1]} : vector<16x32xbf16> to vector<16x8xbf16>
    %cst_16 = arith.constant dense<0.000000e+00> : vector<16x8xf32>
    %40 = tpu.matmul %38, %39, %cst_16 {dimension_numbers = #tpu.dot_dimension_numbers<[1], [0], [0], [1], [0, 0, 1, 1], [], []>} : vector<16x16xbf16>, vector<16x8xbf16>, vector<16x8xf32> -> vector<16x8xf32>
    %41 = vector.extract_strided_slice %22 {offsets = [0, 8], sizes = [16, 8], strides = [1, 1]} : vector<16x32xbf16> to vector<16x8xbf16>
    %42 = vector.extract_strided_slice %23 {offsets = [0, 8], sizes = [16, 8], strides = [1, 1]} : vector<16x32xbf16> to vector<16x8xbf16>
    %cst_17 = arith.constant dense<0.000000e+00> : vector<16x16xf32>
    %43 = tpu.matmul %41, %42, %cst_17 {dimension_numbers = #tpu.dot_dimension_numbers<[1], [1], [0], [0], [0, 0, 1, 0], [], []>} : vector<16x8xbf16>, vector<16x8xbf16>, vector<16x16xf32> -> vector<16x16xf32>
    %44 = arith.addf %43, %4 : vector<16x16xf32>
    %cst_18 = arith.constant dense<0xFF800000> : vector<16xf32>
    %45 = vector.multi_reduction <maximumf>, %44, %cst_18 [1] : vector<16x16xf32> to vector<16xf32>
    %46 = vector.shape_cast %45 : vector<16xf32> to vector<16x1xf32>
    %47 = vector.broadcast %46 : vector<16x1xf32> to vector<16x16xf32>
    %48 = arith.subf %44, %47 : vector<16x16xf32>
    %49 = math.exp %48 : vector<16x16xf32>
    %cst_19 = arith.constant dense<0.000000e+00> : vector<16xf32>
    %50 = vector.multi_reduction <add>, %49, %cst_19 [1] : vector<16x16xf32> to vector<16xf32>
    %51 = vector.shape_cast %50 : vector<16xf32> to vector<16x1xf32>
    %52 = vector.broadcast %51 : vector<16x1xf32> to vector<16x16xf32>
    %53 = arith.divf %49, %52 : vector<16x16xf32>
    %54 = arith.truncf %53 : vector<16x16xf32> to vector<16x16xbf16>
    %55 = vector.extract_strided_slice %24 {offsets = [0, 8], sizes = [16, 8], strides = [1, 1]} : vector<16x32xbf16> to vector<16x8xbf16>
    %cst_20 = arith.constant dense<0.000000e+00> : vector<16x8xf32>
    %56 = tpu.matmul %54, %55, %cst_20 {dimension_numbers = #tpu.dot_dimension_numbers<[1], [0], [0], [1], [0, 0, 1, 1], [], []>} : vector<16x16xbf16>, vector<16x8xbf16>, vector<16x8xf32> -> vector<16x8xf32>
    %57 = vector.extract_strided_slice %22 {offsets = [0, 16], sizes = [16, 8], strides = [1, 1]} : vector<16x32xbf16> to vector<16x8xbf16>
    %58 = vector.extract_strided_slice %23 {offsets = [0, 16], sizes = [16, 8], strides = [1, 1]} : vector<16x32xbf16> to vector<16x8xbf16>
    %cst_21 = arith.constant dense<0.000000e+00> : vector<16x16xf32>
    %59 = tpu.matmul %57, %58, %cst_21 {dimension_numbers = #tpu.dot_dimension_numbers<[1], [1], [0], [0], [0, 0, 1, 0], [], []>} : vector<16x8xbf16>, vector<16x8xbf16>, vector<16x16xf32> -> vector<16x16xf32>
    %60 = arith.addf %59, %4 : vector<16x16xf32>
    %cst_22 = arith.constant dense<0xFF800000> : vector<16xf32>
    %61 = vector.multi_reduction <maximumf>, %60, %cst_22 [1] : vector<16x16xf32> to vector<16xf32>
    %62 = vector.shape_cast %61 : vector<16xf32> to vector<16x1xf32>
    %63 = vector.broadcast %62 : vector<16x1xf32> to vector<16x16xf32>
    %64 = arith.subf %60, %63 : vector<16x16xf32>
    %65 = math.exp %64 : vector<16x16xf32>
    %cst_23 = arith.constant dense<0.000000e+00> : vector<16xf32>
    %66 = vector.multi_reduction <add>, %65, %cst_23 [1] : vector<16x16xf32> to vector<16xf32>
    %67 = vector.shape_cast %66 : vector<16xf32> to vector<16x1xf32>
    %68 = vector.broadcast %67 : vector<16x1xf32> to vector<16x16xf32>
    %69 = arith.divf %65, %68 : vector<16x16xf32>
    %70 = arith.truncf %69 : vector<16x16xf32> to vector<16x16xbf16>
    %71 = vector.extract_strided_slice %24 {offsets = [0, 16], sizes = [16, 8], strides = [1, 1]} : vector<16x32xbf16> to vector<16x8xbf16>
    %cst_24 = arith.constant dense<0.000000e+00> : vector<16x8xf32>
    %72 = tpu.matmul %70, %71, %cst_24 {dimension_numbers = #tpu.dot_dimension_numbers<[1], [0], [0], [1], [0, 0, 1, 1], [], []>} : vector<16x16xbf16>, vector<16x8xbf16>, vector<16x8xf32> -> vector<16x8xf32>
    %73 = vector.extract_strided_slice %22 {offsets = [0, 24], sizes = [16, 8], strides = [1, 1]} : vector<16x32xbf16> to vector<16x8xbf16>
    %74 = vector.extract_strided_slice %23 {offsets = [0, 24], sizes = [16, 8], strides = [1, 1]} : vector<16x32xbf16> to vector<16x8xbf16>
    %cst_25 = arith.constant dense<0.000000e+00> : vector<16x16xf32>
    %75 = tpu.matmul %73, %74, %cst_25 {dimension_numbers = #tpu.dot_dimension_numbers<[1], [1], [0], [0], [0, 0, 1, 0], [], []>} : vector<16x8xbf16>, vector<16x8xbf16>, vector<16x16xf32> -> vector<16x16xf32>
    %76 = arith.addf %75, %4 : vector<16x16xf32>
    %cst_26 = arith.constant dense<0xFF800000> : vector<16xf32>
    %77 = vector.multi_reduction <maximumf>, %76, %cst_26 [1] : vector<16x16xf32> to vector<16xf32>
    %78 = vector.shape_cast %77 : vector<16xf32> to vector<16x1xf32>
    %79 = vector.broadcast %78 : vector<16x1xf32> to vector<16x16xf32>
    %80 = arith.subf %76, %79 : vector<16x16xf32>
    %81 = math.exp %80 : vector<16x16xf32>
    %cst_27 = arith.constant dense<0.000000e+00> : vector<16xf32>
    %82 = vector.multi_reduction <add>, %81, %cst_27 [1] : vector<16x16xf32> to vector<16xf32>
    %83 = vector.shape_cast %82 : vector<16xf32> to vector<16x1xf32>
    %84 = vector.broadcast %83 : vector<16x1xf32> to vector<16x16xf32>
    %85 = arith.divf %81, %84 : vector<16x16xf32>
    %86 = arith.truncf %85 : vector<16x16xf32> to vector<16x16xbf16>
    %87 = vector.extract_strided_slice %24 {offsets = [0, 24], sizes = [16, 8], strides = [1, 1]} : vector<16x32xbf16> to vector<16x8xbf16>
    %cst_28 = arith.constant dense<0.000000e+00> : vector<16x8xf32>
    %88 = tpu.matmul %86, %87, %cst_28 {dimension_numbers = #tpu.dot_dimension_numbers<[1], [0], [0], [1], [0, 0, 1, 1], [], []>} : vector<16x16xbf16>, vector<16x8xbf16>, vector<16x8xf32> -> vector<16x8xf32>
    %89 = tpu.concatenate %40, %56, %72, %88 in 1 : vector<16x8xf32>, vector<16x8xf32>, vector<16x8xf32>, vector<16x8xf32> -> vector<16x32xf32>
    %90 = arith.truncf %89 : vector<16x32xf32> to vector<16x32xbf16>
    %c0_29 = arith.constant 0 : index
    %c128 = arith.constant 128 : index
    %91 = vector.load %arg5[%c0_29, %c128] : memref<32x768xbf16, #tpu.memory_space<vmem>>, vector<32x32xbf16>
    %cst_30 = arith.constant dense<0.000000e+00> : vector<16x32xf32>
    %92 = tpu.matmul %90, %91, %cst_30 {dimension_numbers = #tpu.dot_dimension_numbers<[1], [0], [0], [1], [0, 0, 1, 1], [], []>} : vector<16x32xbf16>, vector<32x32xbf16>, vector<16x32xf32> -> vector<16x32xf32>
    %93 = vector.broadcast %7 : vector<1x32xf32> to vector<16x32xf32>
    %94 = arith.addf %92, %93 : vector<16x32xf32>
    %95 = arith.addf %0, %94 : vector<16x32xf32>
    %cst_31 = arith.constant dense<0.000000e+00> : vector<16xf32>
    %96 = vector.multi_reduction <add>, %95, %cst_31 [1] : vector<16x32xf32> to vector<16xf32>
    %97 = vector.shape_cast %96 : vector<16xf32> to vector<16x1xf32>
    %cst_32 = arith.constant 3.200000e+01 : f32
    %98 = vector.broadcast %cst_32 : f32 to vector<16x1xf32>
    %99 = arith.divf %97, %98 : vector<16x1xf32>
    %100 = vector.broadcast %99 : vector<16x1xf32> to vector<16x32xf32>
    %101 = arith.subf %95, %100 : vector<16x32xf32>
    %102 = arith.mulf %101, %101 : vector<16x32xf32>
    %cst_33 = arith.constant dense<0.000000e+00> : vector<16xf32>
    %103 = vector.multi_reduction <add>, %102, %cst_33 [1] : vector<16x32xf32> to vector<16xf32>
    %104 = vector.shape_cast %103 : vector<16xf32> to vector<16x1xf32>
    %cst_34 = arith.constant 3.200000e+01 : f32
    %105 = vector.broadcast %cst_34 : f32 to vector<16x1xf32>
    %106 = arith.divf %104, %105 : vector<16x1xf32>
    %107 = vector.broadcast %99 : vector<16x1xf32> to vector<16x32xf32>
    %108 = arith.subf %95, %107 : vector<16x32xf32>
    %cst_35 = arith.constant 9.99999974E-6 : f32
    %109 = vector.broadcast %cst_35 : f32 to vector<16x1xf32>
    %110 = arith.addf %106, %109 : vector<16x1xf32>
    %111 = math.rsqrt %110 : vector<16x1xf32>
    %112 = vector.broadcast %111 : vector<16x1xf32> to vector<16x32xf32>
    %113 = arith.mulf %108, %112 : vector<16x32xf32>
    %114 = vector.broadcast %8 : vector<1x32xf32> to vector<16x32xf32>
    %115 = arith.mulf %113, %114 : vector<16x32xf32>
    %116 = vector.broadcast %9 : vector<1x32xf32> to vector<16x32xf32>
    %117 = arith.addf %115, %116 : vector<16x32xf32>
    %118 = arith.truncf %117 : vector<16x32xf32> to vector<16x32xbf16>
    %c0_36 = arith.constant 0 : index
    %c256 = arith.constant 256 : index
    %119 = vector.load %arg5[%c0_36, %c256] : memref<32x768xbf16, #tpu.memory_space<vmem>>, vector<32x32xbf16>
    %cst_37 = arith.constant dense<0.000000e+00> : vector<16x32xf32>
    %120 = tpu.matmul %118, %119, %cst_37 {dimension_numbers = #tpu.dot_dimension_numbers<[1], [0], [0], [1], [0, 0, 1, 1], [], []>} : vector<16x32xbf16>, vector<32x32xbf16>, vector<16x32xf32> -> vector<16x32xf32>
    %c0_38 = arith.constant 0 : index
    %c384 = arith.constant 384 : index
    %121 = vector.load %arg5[%c0_38, %c384] : memref<32x768xbf16, #tpu.memory_space<vmem>>, vector<32x64xbf16>
    %cst_39 = arith.constant dense<0.000000e+00> : vector<24x64xf32>
    %122 = tpu.matmul %3, %121, %cst_39 {dimension_numbers = #tpu.dot_dimension_numbers<[1], [0], [0], [1], [0, 0, 1, 1], [], []>} : vector<24x32xbf16>, vector<32x64xbf16>, vector<24x64xf32> -> vector<24x64xf32>
    %123 = vector.extract_strided_slice %122 {offsets = [0, 0], sizes = [24, 32], strides = [1, 1]} : vector<24x64xf32> to vector<24x32xf32>
    %124 = vector.extract_strided_slice %122 {offsets = [0, 32], sizes = [24, 32], strides = [1, 1]} : vector<24x64xf32> to vector<24x32xf32>
    %125 = arith.truncf %120 : vector<16x32xf32> to vector<16x32xbf16>
    %126 = arith.truncf %123 : vector<24x32xf32> to vector<24x32xbf16>
    %127 = arith.truncf %124 : vector<24x32xf32> to vector<24x32xbf16>
    %128 = vector.extract_strided_slice %125 {offsets = [0, 0], sizes = [16, 8], strides = [1, 1]} : vector<16x32xbf16> to vector<16x8xbf16>
    %129 = vector.extract_strided_slice %126 {offsets = [0, 0], sizes = [24, 8], strides = [1, 1]} : vector<24x32xbf16> to vector<24x8xbf16>
    %cst_40 = arith.constant dense<0.000000e+00> : vector<16x24xf32>
    %130 = tpu.matmul %128, %129, %cst_40 {dimension_numbers = #tpu.dot_dimension_numbers<[1], [1], [0], [0], [0, 0, 1, 0], [], []>} : vector<16x8xbf16>, vector<24x8xbf16>, vector<16x24xf32> -> vector<16x24xf32>
    %131 = arith.addf %130, %5 : vector<16x24xf32>
    %cst_41 = arith.constant dense<0xFF800000> : vector<16xf32>
    %132 = vector.multi_reduction <maximumf>, %131, %cst_41 [1] : vector<16x24xf32> to vector<16xf32>
    %133 = vector.shape_cast %132 : vector<16xf32> to vector<16x1xf32>
    %134 = vector.broadcast %133 : vector<16x1xf32> to vector<16x24xf32>
    %135 = arith.subf %131, %134 : vector<16x24xf32>
    %136 = math.exp %135 : vector<16x24xf32>
    %cst_42 = arith.constant dense<0.000000e+00> : vector<16xf32>
    %137 = vector.multi_reduction <add>, %136, %cst_42 [1] : vector<16x24xf32> to vector<16xf32>
    %138 = vector.shape_cast %137 : vector<16xf32> to vector<16x1xf32>
    %139 = vector.broadcast %138 : vector<16x1xf32> to vector<16x24xf32>
    %140 = arith.divf %136, %139 : vector<16x24xf32>
    %141 = arith.truncf %140 : vector<16x24xf32> to vector<16x24xbf16>
    %142 = vector.extract_strided_slice %127 {offsets = [0, 0], sizes = [24, 8], strides = [1, 1]} : vector<24x32xbf16> to vector<24x8xbf16>
    %cst_43 = arith.constant dense<0.000000e+00> : vector<16x8xf32>
    %143 = tpu.matmul %141, %142, %cst_43 {dimension_numbers = #tpu.dot_dimension_numbers<[1], [0], [0], [1], [0, 0, 1, 1], [], []>} : vector<16x24xbf16>, vector<24x8xbf16>, vector<16x8xf32> -> vector<16x8xf32>
    %144 = vector.extract_strided_slice %125 {offsets = [0, 8], sizes = [16, 8], strides = [1, 1]} : vector<16x32xbf16> to vector<16x8xbf16>
    %145 = vector.extract_strided_slice %126 {offsets = [0, 8], sizes = [24, 8], strides = [1, 1]} : vector<24x32xbf16> to vector<24x8xbf16>
    %cst_44 = arith.constant dense<0.000000e+00> : vector<16x24xf32>
    %146 = tpu.matmul %144, %145, %cst_44 {dimension_numbers = #tpu.dot_dimension_numbers<[1], [1], [0], [0], [0, 0, 1, 0], [], []>} : vector<16x8xbf16>, vector<24x8xbf16>, vector<16x24xf32> -> vector<16x24xf32>
    %147 = arith.addf %146, %5 : vector<16x24xf32>
    %cst_45 = arith.constant dense<0xFF800000> : vector<16xf32>
    %148 = vector.multi_reduction <maximumf>, %147, %cst_45 [1] : vector<16x24xf32> to vector<16xf32>
    %149 = vector.shape_cast %148 : vector<16xf32> to vector<16x1xf32>
    %150 = vector.broadcast %149 : vector<16x1xf32> to vector<16x24xf32>
    %151 = arith.subf %147, %150 : vector<16x24xf32>
    %152 = math.exp %151 : vector<16x24xf32>
    %cst_46 = arith.constant dense<0.000000e+00> : vector<16xf32>
    %153 = vector.multi_reduction <add>, %152, %cst_46 [1] : vector<16x24xf32> to vector<16xf32>
    %154 = vector.shape_cast %153 : vector<16xf32> to vector<16x1xf32>
    %155 = vector.broadcast %154 : vector<16x1xf32> to vector<16x24xf32>
    %156 = arith.divf %152, %155 : vector<16x24xf32>
    %157 = arith.truncf %156 : vector<16x24xf32> to vector<16x24xbf16>
    %158 = vector.extract_strided_slice %127 {offsets = [0, 8], sizes = [24, 8], strides = [1, 1]} : vector<24x32xbf16> to vector<24x8xbf16>
    %cst_47 = arith.constant dense<0.000000e+00> : vector<16x8xf32>
    %159 = tpu.matmul %157, %158, %cst_47 {dimension_numbers = #tpu.dot_dimension_numbers<[1], [0], [0], [1], [0, 0, 1, 1], [], []>} : vector<16x24xbf16>, vector<24x8xbf16>, vector<16x8xf32> -> vector<16x8xf32>
    %160 = vector.extract_strided_slice %125 {offsets = [0, 16], sizes = [16, 8], strides = [1, 1]} : vector<16x32xbf16> to vector<16x8xbf16>
    %161 = vector.extract_strided_slice %126 {offsets = [0, 16], sizes = [24, 8], strides = [1, 1]} : vector<24x32xbf16> to vector<24x8xbf16>
    %cst_48 = arith.constant dense<0.000000e+00> : vector<16x24xf32>
    %162 = tpu.matmul %160, %161, %cst_48 {dimension_numbers = #tpu.dot_dimension_numbers<[1], [1], [0], [0], [0, 0, 1, 0], [], []>} : vector<16x8xbf16>, vector<24x8xbf16>, vector<16x24xf32> -> vector<16x24xf32>
    %163 = arith.addf %162, %5 : vector<16x24xf32>
    %cst_49 = arith.constant dense<0xFF800000> : vector<16xf32>
    %164 = vector.multi_reduction <maximumf>, %163, %cst_49 [1] : vector<16x24xf32> to vector<16xf32>
    %165 = vector.shape_cast %164 : vector<16xf32> to vector<16x1xf32>
    %166 = vector.broadcast %165 : vector<16x1xf32> to vector<16x24xf32>
    %167 = arith.subf %163, %166 : vector<16x24xf32>
    %168 = math.exp %167 : vector<16x24xf32>
    %cst_50 = arith.constant dense<0.000000e+00> : vector<16xf32>
    %169 = vector.multi_reduction <add>, %168, %cst_50 [1] : vector<16x24xf32> to vector<16xf32>
    %170 = vector.shape_cast %169 : vector<16xf32> to vector<16x1xf32>
    %171 = vector.broadcast %170 : vector<16x1xf32> to vector<16x24xf32>
    %172 = arith.divf %168, %171 : vector<16x24xf32>
    %173 = arith.truncf %172 : vector<16x24xf32> to vector<16x24xbf16>
    %174 = vector.extract_strided_slice %127 {offsets = [0, 16], sizes = [24, 8], strides = [1, 1]} : vector<24x32xbf16> to vector<24x8xbf16>
    %cst_51 = arith.constant dense<0.000000e+00> : vector<16x8xf32>
    %175 = tpu.matmul %173, %174, %cst_51 {dimension_numbers = #tpu.dot_dimension_numbers<[1], [0], [0], [1], [0, 0, 1, 1], [], []>} : vector<16x24xbf16>, vector<24x8xbf16>, vector<16x8xf32> -> vector<16x8xf32>
    %176 = vector.extract_strided_slice %125 {offsets = [0, 24], sizes = [16, 8], strides = [1, 1]} : vector<16x32xbf16> to vector<16x8xbf16>
    %177 = vector.extract_strided_slice %126 {offsets = [0, 24], sizes = [24, 8], strides = [1, 1]} : vector<24x32xbf16> to vector<24x8xbf16>
    %cst_52 = arith.constant dense<0.000000e+00> : vector<16x24xf32>
    %178 = tpu.matmul %176, %177, %cst_52 {dimension_numbers = #tpu.dot_dimension_numbers<[1], [1], [0], [0], [0, 0, 1, 0], [], []>} : vector<16x8xbf16>, vector<24x8xbf16>, vector<16x24xf32> -> vector<16x24xf32>
    %179 = arith.addf %178, %5 : vector<16x24xf32>
    %cst_53 = arith.constant dense<0xFF800000> : vector<16xf32>
    %180 = vector.multi_reduction <maximumf>, %179, %cst_53 [1] : vector<16x24xf32> to vector<16xf32>
    %181 = vector.shape_cast %180 : vector<16xf32> to vector<16x1xf32>
    %182 = vector.broadcast %181 : vector<16x1xf32> to vector<16x24xf32>
    %183 = arith.subf %179, %182 : vector<16x24xf32>
    %184 = math.exp %183 : vector<16x24xf32>
    %cst_54 = arith.constant dense<0.000000e+00> : vector<16xf32>
    %185 = vector.multi_reduction <add>, %184, %cst_54 [1] : vector<16x24xf32> to vector<16xf32>
    %186 = vector.shape_cast %185 : vector<16xf32> to vector<16x1xf32>
    %187 = vector.broadcast %186 : vector<16x1xf32> to vector<16x24xf32>
    %188 = arith.divf %184, %187 : vector<16x24xf32>
    %189 = arith.truncf %188 : vector<16x24xf32> to vector<16x24xbf16>
    %190 = vector.extract_strided_slice %127 {offsets = [0, 24], sizes = [24, 8], strides = [1, 1]} : vector<24x32xbf16> to vector<24x8xbf16>
    %cst_55 = arith.constant dense<0.000000e+00> : vector<16x8xf32>
    %191 = tpu.matmul %189, %190, %cst_55 {dimension_numbers = #tpu.dot_dimension_numbers<[1], [0], [0], [1], [0, 0, 1, 1], [], []>} : vector<16x24xbf16>, vector<24x8xbf16>, vector<16x8xf32> -> vector<16x8xf32>
    %192 = tpu.concatenate %143, %159, %175, %191 in 1 : vector<16x8xf32>, vector<16x8xf32>, vector<16x8xf32>, vector<16x8xf32> -> vector<16x32xf32>
    %193 = arith.truncf %192 : vector<16x32xf32> to vector<16x32xbf16>
    %c0_56 = arith.constant 0 : index
    %c512 = arith.constant 512 : index
    %194 = vector.load %arg5[%c0_56, %c512] : memref<32x768xbf16, #tpu.memory_space<vmem>>, vector<32x32xbf16>
    %cst_57 = arith.constant dense<0.000000e+00> : vector<16x32xf32>
    %195 = tpu.matmul %193, %194, %cst_57 {dimension_numbers = #tpu.dot_dimension_numbers<[1], [0], [0], [1], [0, 0, 1, 1], [], []>} : vector<16x32xbf16>, vector<32x32xbf16>, vector<16x32xf32> -> vector<16x32xf32>
    %196 = vector.broadcast %10 : vector<1x32xf32> to vector<16x32xf32>
    %197 = arith.addf %195, %196 : vector<16x32xf32>
    %198 = arith.addf %117, %197 : vector<16x32xf32>
    %cst_58 = arith.constant dense<0.000000e+00> : vector<16xf32>
    %199 = vector.multi_reduction <add>, %198, %cst_58 [1] : vector<16x32xf32> to vector<16xf32>
    %200 = vector.shape_cast %199 : vector<16xf32> to vector<16x1xf32>
    %cst_59 = arith.constant 3.200000e+01 : f32
    %201 = vector.broadcast %cst_59 : f32 to vector<16x1xf32>
    %202 = arith.divf %200, %201 : vector<16x1xf32>
    %203 = vector.broadcast %202 : vector<16x1xf32> to vector<16x32xf32>
    %204 = arith.subf %198, %203 : vector<16x32xf32>
    %205 = arith.mulf %204, %204 : vector<16x32xf32>
    %cst_60 = arith.constant dense<0.000000e+00> : vector<16xf32>
    %206 = vector.multi_reduction <add>, %205, %cst_60 [1] : vector<16x32xf32> to vector<16xf32>
    %207 = vector.shape_cast %206 : vector<16xf32> to vector<16x1xf32>
    %cst_61 = arith.constant 3.200000e+01 : f32
    %208 = vector.broadcast %cst_61 : f32 to vector<16x1xf32>
    %209 = arith.divf %207, %208 : vector<16x1xf32>
    %210 = vector.broadcast %202 : vector<16x1xf32> to vector<16x32xf32>
    %211 = arith.subf %198, %210 : vector<16x32xf32>
    %cst_62 = arith.constant 9.99999974E-6 : f32
    %212 = vector.broadcast %cst_62 : f32 to vector<16x1xf32>
    %213 = arith.addf %209, %212 : vector<16x1xf32>
    %214 = math.rsqrt %213 : vector<16x1xf32>
    %215 = vector.broadcast %214 : vector<16x1xf32> to vector<16x32xf32>
    %216 = arith.mulf %211, %215 : vector<16x32xf32>
    %217 = vector.broadcast %11 : vector<1x32xf32> to vector<16x32xf32>
    %218 = arith.mulf %216, %217 : vector<16x32xf32>
    %219 = vector.broadcast %12 : vector<1x32xf32> to vector<16x32xf32>
    %220 = arith.addf %218, %219 : vector<16x32xf32>
    %221 = arith.truncf %220 : vector<16x32xf32> to vector<16x32xbf16>
    %c0_63 = arith.constant 0 : index
    %c640 = arith.constant 640 : index
    %222 = vector.load %arg5[%c0_63, %c640] : memref<32x768xbf16, #tpu.memory_space<vmem>>, vector<32x128xbf16>
    %cst_64 = arith.constant dense<0.000000e+00> : vector<16x128xf32>
    %223 = tpu.matmul %221, %222, %cst_64 {dimension_numbers = #tpu.dot_dimension_numbers<[1], [0], [0], [1], [0, 0, 1, 1], [], []>} : vector<16x32xbf16>, vector<32x128xbf16>, vector<16x128xf32> -> vector<16x128xf32>
    %224 = vector.broadcast %16 : vector<1x128xf32> to vector<16x128xf32>
    %225 = arith.addf %223, %224 : vector<16x128xf32>
    %cst_65 = arith.constant 0.000000e+00 : f32
    %226 = vector.broadcast %cst_65 : f32 to vector<16x128xf32>
    %227 = arith.maximumf %225, %226 : vector<16x128xf32>
    %228 = arith.truncf %227 : vector<16x128xf32> to vector<16x128xbf16>
    %c0_66 = arith.constant 0 : index
    %c0_67 = arith.constant 0 : index
    %229 = vector.load %arg6[%c0_66, %c0_67] : memref<128x32xbf16, #tpu.memory_space<vmem>>, vector<128x32xbf16>
    %cst_68 = arith.constant dense<0.000000e+00> : vector<16x32xf32>
    %230 = tpu.matmul %228, %229, %cst_68 {dimension_numbers = #tpu.dot_dimension_numbers<[1], [0], [0], [1], [0, 0, 1, 1], [], []>} : vector<16x128xbf16>, vector<128x32xbf16>, vector<16x32xf32> -> vector<16x32xf32>
    %231 = vector.broadcast %13 : vector<1x32xf32> to vector<16x32xf32>
    %232 = arith.addf %230, %231 : vector<16x32xf32>
    %233 = arith.addf %220, %232 : vector<16x32xf32>
    %cst_69 = arith.constant dense<0.000000e+00> : vector<16xf32>
    %234 = vector.multi_reduction <add>, %233, %cst_69 [1] : vector<16x32xf32> to vector<16xf32>
    %235 = vector.shape_cast %234 : vector<16xf32> to vector<16x1xf32>
    %cst_70 = arith.constant 3.200000e+01 : f32
    %236 = vector.broadcast %cst_70 : f32 to vector<16x1xf32>
    %237 = arith.divf %235, %236 : vector<16x1xf32>
    %238 = vector.broadcast %237 : vector<16x1xf32> to vector<16x32xf32>
    %239 = arith.subf %233, %238 : vector<16x32xf32>
    %240 = arith.mulf %239, %239 : vector<16x32xf32>
    %cst_71 = arith.constant dense<0.000000e+00> : vector<16xf32>
    %241 = vector.multi_reduction <add>, %240, %cst_71 [1] : vector<16x32xf32> to vector<16xf32>
    %242 = vector.shape_cast %241 : vector<16xf32> to vector<16x1xf32>
    %cst_72 = arith.constant 3.200000e+01 : f32
    %243 = vector.broadcast %cst_72 : f32 to vector<16x1xf32>
    %244 = arith.divf %242, %243 : vector<16x1xf32>
    %245 = vector.broadcast %237 : vector<16x1xf32> to vector<16x32xf32>
    %246 = arith.subf %233, %245 : vector<16x32xf32>
    %cst_73 = arith.constant 9.99999974E-6 : f32
    %247 = vector.broadcast %cst_73 : f32 to vector<16x1xf32>
    %248 = arith.addf %244, %247 : vector<16x1xf32>
    %249 = math.rsqrt %248 : vector<16x1xf32>
    %250 = vector.broadcast %249 : vector<16x1xf32> to vector<16x32xf32>
    %251 = arith.mulf %246, %250 : vector<16x32xf32>
    %252 = vector.broadcast %14 : vector<1x32xf32> to vector<16x32xf32>
    %253 = arith.mulf %251, %252 : vector<16x32xf32>
    %254 = vector.broadcast %15 : vector<1x32xf32> to vector<16x32xf32>
    %255 = arith.addf %253, %254 : vector<16x32xf32>
    %c0_74 = arith.constant 0 : index
    %c0_75 = arith.constant 0 : index
    %256 = vector.load %arg9[%c0_74, %c0_75] : memref<16x32xf32, #tpu.memory_space<vmem>>, vector<16x32xf32>
    tpu.vector_store %arg9[%c0_74, %c0_75], %255 {strides = array<i32>} : memref<16x32xf32, #tpu.memory_space<vmem>>, vector<16x32xf32>,
    return
  }
  func.func @transform_0(%arg0: i32) -> (i32, i32) {
    %c0_i32 = arith.constant 0 : i32
    %c0_i32_0 = arith.constant 0 : i32
    %c0_i32_1 = arith.constant 0 : i32
    return %c0_i32, %c0_i32_0 : i32, i32
  }
  func.func @transform_1(%arg0: i32) -> (i32, i32) {
    %c0_i32 = arith.constant 0 : i32
    %c0_i32_0 = arith.constant 0 : i32
    %c0_i32_1 = arith.constant 0 : i32
    return %c0_i32, %c0_i32_0 : i32, i32
  }
  func.func @transform_2(%arg0: i32) -> (i32, i32) {
    %c0_i32 = arith.constant 0 : i32
    %c0_i32_0 = arith.constant 0 : i32
    %c0_i32_1 = arith.constant 0 : i32
    return %c0_i32, %c0_i32_0 : i32, i32
  }
  func.func @transform_3(%arg0: i32) -> (i32, i32) {
    %c0_i32 = arith.constant 0 : i32
    %c0_i32_0 = arith.constant 0 : i32
    %c0_i32_1 = arith.constant 0 : i32
    return %c0_i32, %c0_i32_0 : i32, i32
  }
  func.func @transform_4(%arg0: i32) -> (i32, i32) {
    %c0_i32 = arith.constant 0 : i32
    %c0_i32_0 = arith.constant 0 : i32
    %c0_i32_1 = arith.constant 0 : i32
    return %c0_i32, %c0_i32_0 : i32, i32
  }
  func.func @transform_5(%arg0: i32) -> (i32, i32) {
    %c0_i32 = arith.constant 0 : i32
    %c0_i32_0 = arith.constant 0 : i32
    %c0_i32_1 = arith.constant 0 : i32
    return %c0_i32, %c0_i32_0 : i32, i32
  }
  func.func @transform_6(%arg0: i32) -> (i32, i32) {
    %c0_i32 = arith.constant 0 : i32
    %c0_i32_0 = arith.constant 0 : i32
    %c0_i32_1 = arith.constant 0 : i32
    return %c0_i32, %c0_i32_0 : i32, i32
  }
  func.func @transform_7(%arg0: i32) -> (i32, i32) {
    %c0_i32 = arith.constant 0 : i32
    %c0_i32_0 = arith.constant 0 : i32
    %c0_i32_1 = arith.constant 0 : i32
    return %c0_i32, %c0_i32_0 : i32, i32
  }
  func.func @transform_8(%arg0: i32) -> (i32, i32) {
    %c0_i32 = arith.constant 0 : i32
    %c0_i32_0 = arith.constant 0 : i32
    %c0_i32_1 = arith.constant 0 : i32
    return %c0_i32, %c0_i32_0 : i32, i32
  }
}

</mosaic_0001>

<bundles_post_ra>
// kernel: tpu_custom_call.1
= control target key start
LH: loop header
LB: loop body
LE: loop exit
PB: predicated region body
PF: predicated region fallthrough
CT: control target
= control target key end

     0   :  { %13 = vsyncpa [#allocation3], 0  ;;  %s2713_s0 = inlined_call_operand.vmem [shape: f32[16,32], index: 0, kind: input, shape index: {}]   ;;  %s2714_s1 = inlined_call_operand.vmem [shape: f32[24,32], index: 1, kind: input, shape index: {}]   ;;  %s2715_s2 = inlined_call_operand.vmem [shape: f32[16,16], index: 2, kind: input, shape index: {}]   ;;  %s2716_s3 = inlined_call_operand.vmem [shape: f32[16,24], index: 3, kind: input, shape index: {}]   ;;  %s2717_s4 = inlined_call_operand.hbm [shape: bf16[32,768], index: 4, kind: input, shape index: {}]   ;;  %s2718_s5 = inlined_call_operand.vmem [shape: bf16[128,32], index: 5, kind: input, shape index: {}]   ;;  %s2719_s6 = inlined_call_operand.vmem [shape: f32[9,32], index: 6, kind: input, shape index: {}]   ;;  %s2720_s7 = inlined_call_operand.vmem [shape: f32[1,128], index: 7, kind: input, shape index: {}]   ;;  %s2721_s8 = inlined_call_operand.hbm [shape: f32[16,32], index: 8, kind: output, shape index: {}]  }
   0x1   :  { %14 = vsyncpa [#allocation4], 0  ;;  %s2256_s27 = smov [#allocation2]  }
   0x2   :  { %s28_s28 = sshll.u32 %s2256_s27, 4  ;;  %s29_s28 = int_to_ptr.vmem [resolvable:$true] %s28_s28 }
   0x3   :  { %s2220_s29 = scalar_lea.vmem %s29_s28, 1536  ;;  %p2225_p1 = scmp.lt.s32.totalorder %s29_s28, %s29_s28 }
   0x4   :  { %p2221_p0 = scmp.ne.s32.totalorder %s29_s28, %s2220_s29  ;;  %p2226_p2 = scmp.lt.s32.totalorder %s2220_s29, %s2220_s29 }
   0x6   :  { %p2227_p3 = por %p2226_p2, %p2225_p1 }
   0x8   :  { %p2228_p4 = pnand %p2227_p3, %p2221_p0 }
   0xa   :  { %2231 = shalt.err (!%p2228_p4)
}
   0xb   :  { %s2257_s30 = smov 384   ;;  %s2258_s9 = smov 24  }
   0xc   :  { %34 = dma.hbm_to_vmem [thread:$0]  %s2717_s4, 1536, %s29_s28, [#allocation3], %s2257_s30, %s2257_s30, %s2258_s9  }
   0xd   :  { %2252 = dma.done.wait [#allocation3], 1536  }
   0xe   :  { %2253 = vsyncadd [#allocation3], 4294965760  ;;  %v2259_v0 = vmov 0.0   ;;  %vm2260_vm0 = vmmov 0   ;;  %v2116_v1 = vld [vmem:[#allocation2 + $0x30] ss:$24 sps:$4 sm:$0xff]  }
   0xf   :  { %1886 = vmatprep.subr.bf16.mxu0 %v2259_v0  ;;  %1890 = vmatprep.mubr.msk.bf16.mxu0 %vm2260_vm0, %v2259_v0  ;;  %v2117_v2 = vld [vmem:[#allocation2] ss:$24 sps:$4 sm:$0xff]   ;;  %v2339_v4 = vld [vmem:[%s2713_s0 + $0x8] sm:$0xff]  ;;  %vm76_vm1 = vcmask 261120   ;;  %s2262_s15 = smov 96   ;;  %s2263_s16 = smov 80  }
  0x10   :  { %1894 = vmatprep.subr.bf16.mxu1 %v2259_v0  ;;  %1896 = vmatprep.mubr.msk.bf16.mxu1 %vm2260_vm0, %v2259_v0  ;;  %v2334_v3 = vld [vmem:[%s2713_s0] sm:$0xff]  ;;  %s2261_s0 = smov 120   ;;  %s2264_s17 = smov 88   ;;  %vm125_vm2 = vcmask 64512   ;;  %vm173_vm3 = vcmask 130048   ;;  %v54_v26 = vld [vmem:[%s2715_s2 + $0x8] sm:$0xff] }
  0x11   :  { %1887 = vmatpush3.bf16.msra.mxu0 %v2116_v1  ;;  %v47_v5 = vpack.c.bf16 %v2339_v4, %v2334_v3  ;;  %s2265_s18 = smov 72   ;;  %s2266_s19 = smov 112   ;;  %v53_v22 = vld [vmem:[%s2715_s2] sm:$0xff]  ;;  %vm635_vm4 = vcmask 195584   ;;  %vm961_vm5 = vcmask 1043456  }
  0x12   :  { %1888 = vmatprep.subr.bf16.mxu0 %v2259_v0  ;;  %s2267_s20 = smov 104   ;;  %s2268_s2 = smov 56  }
  0x13   :  { %s2269_s25 = smov 64   ;;  %s2270_s26 = smov 48  }
  0x14   :  { %s2271_s27 = smov 40   ;;  %s2272_s28 = smov 8  }
  0x15   :  { %1889 = vmatpush3.bf16.msra.mxu0 %v2117_v2  ;;  %s2273_s29 = smov 16   ;;  %s2274_s13 = smov [#allocation5]  }
  0x16   :  { %1900 = vmatprep.subr.bf16.mxu0 %v2259_v0  ;;  %s1761_s4 = sshll.u32 %s2274_s13, 4  ;;  %s1762_s4 = int_to_ptr.vmem [resolvable:$true] %s1761_s4 }
  0x17   :  { %s2232_s14 = scalar_lea.vmem %s1762_s4, 256  ;;  %p2237_p6 = scmp.lt.s32.totalorder %s1762_s4, %s1762_s4 }
  0x18   :  { %1891 = vmatmul.mubr.msk.bf16.vlgmr.msra.gmra.mxu0 %vm76_vm1, %v47_v5  ;;  %p2233_p5 = scmp.ne.s32.totalorder %s1762_s4, %s2232_s14  ;;  %p2238_p7 = scmp.lt.s32.totalorder %s2232_s14, %s2232_s14 }
  0x19   :  { %1902 = vmatprep.mubr.msk.bf16.mxu0 %vm2260_vm0, %v2259_v0 }
  0x1a   :  { %p2239_p8 = por %p2238_p7, %p2237_p6 }
  0x1c   :  { %p2240_p9 = pnand %p2239_p8, %p2233_p5 }
  0xd8   :  { %v114_v6 = vpop.f32.mrf.mxu0 }
  0xda   :  { %v1892_v7 = vpop.f32.mrf.mxu0 }
  0xdc   :  { %v117_v8 = vpop.f32.mrf.mxu0 }
  0xdd   :  { %v2348_v9 = vpack.c.bf16 %v117_v8, %v114_v6 }
  0xde   :  { %v1893_v10 = vpop.f32.mrf.mxu0 }
  0xdf   :  { %244 = vrot.lane.b32.xlu1 %v2348_v9, %s2261_s0  ;;  %123 = vrot.lane.b32.xlu0 %v2348_v9, %s2262_s15 }
  0xe3   :  { %367 = vrot.lane.b32.xlu1 %v2348_v9, %s2263_s16  ;;  %246 = vrot.lane.b32.xlu0 %v2348_v9, %s2264_s17 }
  0xe7   :  { %488 = vrot.lane.b32.xlu1 %v2348_v9, %s2265_s18  ;;  %365 = vrot.lane.b32.xlu0 %v2348_v9, %s2266_s19 }
  0xeb   :  { %486 = vrot.lane.b32.xlu0 %v2348_v9, %s2267_s20 }
 0x151   :  { %v124_v11 = vpop.permute.xlu0 %123  ;;  %v245_v14 = vpop.permute.xlu1 %244 }
 0x152   :  { %v130_v12 = vsel %vm125_vm2, %v124_v11, 0 }
 0x153   :  { %1895 = vmatpush3.bf16.xpose.msra.mxu1 %v130_v12 }
 0x154   :  { %1906 = vmatprep.subr.bf16.mxu1 %v2259_v0 }
 0x155   :  { %v247_v13 = vpop.permute.xlu0 %246  ;;  %v368_v16 = vpop.permute.xlu1 %367 }
 0x156   :  { %v252_v15 = vsel %vm125_vm2, %v247_v13, 0  ;;  %v373_v17 = vsel %vm125_vm2, %v368_v16, 0 }
 0x159   :  { %v489_v18 = vpop.permute.xlu1 %488  ;;  %v366_v19 = vpop.permute.xlu0 %365 }
 0x15a   :  { %1897 = vmatmul.mubr.msk.bf16.vlgmr.msra.gmra.mxu1 %vm125_vm2, %v2348_v9  ;;  %v494_v20 = vsel %vm125_vm2, %v489_v18, 0 }
 0x15b   :  { %1907 = vmatpush3.bf16.xpose.msra.mxu1 %v252_v15  ;;  %1908 = vmatprep.mubr.msk.bf16.mxu1 %vm2260_vm0, %v2259_v0 }
 0x15c   :  { %1918 = vmatprep.subr.bf16.mxu1 %v2259_v0 }
 0x15d   :  { %v487_v21 = vpop.permute.xlu0 %486 }
 0x162   :  { %1909 = vmatmul.mubr.msk.bf16.vlgmr.msra.gmra.mxu1 %vm125_vm2, %v245_v14 }
 0x163   :  { %1919 = vmatpush3.bf16.xpose.msra.mxu1 %v373_v17  ;;  %1920 = vmatprep.mubr.msk.bf16.mxu1 %vm2260_vm0, %v2259_v0 }
 0x164   :  { %1930 = vmatprep.subr.bf16.mxu1 %v2259_v0 }
 0x16a   :  { %1921 = vmatmul.mubr.msk.bf16.vlgmr.msra.gmra.mxu1 %vm125_vm2, %v366_v19 }
 0x16b   :  { %1931 = vmatpush3.bf16.xpose.msra.mxu1 %v494_v20  ;;  %1932 = vmatprep.mubr.msk.bf16.mxu1 %vm2260_vm0, %v2259_v0 }
 0x16c   :  { %1942 = vmatprep.subr.bf16.mxu1 %v2259_v0 }
 0x172   :  { %1933 = vmatmul.mubr.msk.bf16.vlgmr.msra.gmra.mxu1 %vm125_vm2, %v487_v21 }
 0x173   :  { %1946 = vmatprep.mubr.msk.bf16.mxu1 %vm2260_vm0, %v2259_v0 }
 0x21a   :  { %v166_v23 = vpop.f32.mrf.mxu1 }
 0x21b   :  { %v167_v24 = vadd.f32 %v166_v23, %v53_v22 }
 0x21c   :  { %v1898_v25 = vpop.f32.mrf.mxu1 }
 0x21d   :  { %v174_v27 = vsel %vm173_vm3, %v167_v24, -inf }
 0x21e   :  { %175 = vmax.xlane.f32.xlu1 %v174_v27  ;;  %v169_v28 = vpop.f32.mrf.mxu1 }
 0x21f   :  { %v170_v29 = vadd.f32 %v169_v28, %v54_v26 }
 0x220   :  { %v1899_v30 = vpop.f32.mrf.mxu1 }
 0x221   :  { %v177_v31 = vsel %vm173_vm3, %v170_v29, -inf }
 0x222   :  { %178 = vmax.xlane.f32.xlu0 %v177_v31  ;;  %v288_v32 = vpop.f32.mrf.mxu1 }
 0x223   :  { %v289_v33 = vadd.f32 %v288_v32, %v53_v22 }
 0x224   :  { %v1910_v34 = vpop.f32.mrf.mxu1 }
 0x225   :  { %v295_v35 = vsel %vm173_vm3, %v289_v33, -inf }
 0x226   :  { %296 = vmax.xlane.f32.xlu0 %v295_v35  ;;  %v291_v36 = vpop.f32.mrf.mxu1 }
 0x227   :  { %v292_v37 = vadd.f32 %v291_v36, %v54_v26 }
 0x228   :  { %v1911_v38 = vpop.f32.mrf.mxu1 }
 0x229   :  { %v298_v39 = vsel %vm173_vm3, %v292_v37, -inf }
 0x22a   :  { %299 = vmax.xlane.f32.xlu1 %v298_v39  ;;  %v409_v40 = vpop.f32.mrf.mxu1 }
 0x22b   :  { %v410_v41 = vadd.f32 %v409_v40, %v53_v22 }
 0x22c   :  { %v1922_v42 = vpop.f32.mrf.mxu1 }
 0x22d   :  { %v416_v43 = vsel %vm173_vm3, %v410_v41, -inf }
 0x22e   :  { %417 = vmax.xlane.f32.xlu0 %v416_v43  ;;  %v412_v44 = vpop.f32.mrf.mxu1 }
 0x22f   :  { %v413_v45 = vadd.f32 %v412_v44, %v54_v26 }
 0x230   :  { %v1923_v46 = vpop.f32.mrf.mxu1 }
 0x231   :  { %v419_v47 = vsel %vm173_vm3, %v413_v45, -inf }
 0x232   :  { %420 = vmax.xlane.f32.xlu1 %v419_v47  ;;  %v530_v48 = vpop.f32.mrf.mxu1 }
 0x233   :  { %v531_v49 = vadd.f32 %v530_v48, %v53_v22 }
 0x234   :  { %v1934_v50 = vpop.f32.mrf.mxu1 }
 0x235   :  { %v537_v51 = vsel %vm173_vm3, %v531_v49, -inf }
 0x236   :  { %538 = vmax.xlane.f32.xlu0 %v537_v51  ;;  %v533_v52 = vpop.f32.mrf.mxu1 }
 0x237   :  { %v534_v53 = vadd.f32 %v533_v52, %v54_v26 }
 0x238   :  { %v1935_v54 = vpop.f32.mrf.mxu1 }
 0x239   :  { %v540_v55 = vsel %vm173_vm3, %v534_v53, -inf }
 0x23a   :  { %541 = vmax.xlane.f32.xlu1 %v540_v55 }
 0x2a7   :  { %v176_v56 = vpop.xlane.xlu1 %175 }
 0x2a8   :  { %v180_v57 = vsub.f32 %v167_v24, %v176_v56 }
 0x2aa   :  { %v182_v58 = vmul.f32 1.442695, %v180_v57 }
 0x2ab   :  { %v179_v59 = vpop.xlane.xlu0 %178 }
 0x2ac   :  { %2136 = vpow2.f32 %v182_v58  ;;  %v181_v60 = vsub.f32 %v170_v29, %v179_v59 }
 0x2ae   :  { %v184_v61 = vmul.f32 1.442695, %v181_v60 }
 0x2af   :  { %v297_v62 = vpop.xlane.xlu0 %296 }
 0x2b0   :  { %2138 = vpow2.f32 %v184_v61  ;;  %v301_v63 = vsub.f32 %v289_v33, %v297_v62 }
 0x2b2   :  { %v303_v1 = vmul.f32 1.442695, %v301_v63 }
 0x2b3   :  { %v300_v11 = vpop.xlane.xlu1 %299 }
 0x2b4   :  { %2140 = vpow2.f32 %v303_v1  ;;  %v302_v12 = vsub.f32 %v292_v37, %v300_v11 }
 0x2b6   :  { %v305_v16 = vmul.f32 1.442695, %v302_v12 }
 0x2b7   :  { %v418_v13 = vpop.xlane.xlu0 %417 }
 0x2b8   :  { %v422_v15 = vsub.f32 %v410_v41, %v418_v13  ;;  %2142 = vpow2.f32 %v305_v16 }
 0x2b9   :  { %v2137_v2 = vpop.eup %2136 }
 0x2ba   :  { %v186_v5 = vsel %vm173_vm3, %v2137_v2, 0.0  ;;  %v424_v20 = vmul.f32 1.442695, %v422_v15 }
 0x2bb   :  { %187 = vadd.xlane.f32.xlu0 %v186_v5  ;;  %v421_v14 = vpop.xlane.xlu1 %420 }
 0x2bc   :  { %v423_v17 = vsub.f32 %v413_v45, %v421_v14  ;;  %2144 = vpow2.f32 %v424_v20  ;;  %v2118_v14 = vld [vmem:[#allocation2 + $0x34] ss:$24 sps:$4 sm:$0xff]  }
 0x2bd   :  { %v2139_v6 = vpop.eup %2138  ;;  %1943 = vmatpush3.bf16.msra.mxu1 %v2118_v14  ;;  %v2123_v14 = vld [vmem:[#allocation2 + $0x8] ss:$24 sps:$4 sm:$0xff]  }
 0x2be   :  { %v189_v7 = vsel %vm173_vm3, %v2139_v6, 0.0  ;;  %v426_v22 = vmul.f32 1.442695, %v423_v17  ;;  %1944 = vmatprep.subr.bf16.mxu1 %v2259_v0 }
 0x2bf   :  { %190 = vadd.xlane.f32.xlu1 %v189_v7  ;;  %v539_v18 = vpop.xlane.xlu0 %538 }
 0x2c0   :  { %v543_v21 = vsub.f32 %v531_v49, %v539_v18  ;;  %2146 = vpow2.f32 %v426_v22 }
 0x2c1   :  { %v2401_v8 = vpop.eup %2140 }
 0x2c2   :  { %v307_v10 = vsel %vm173_vm3, %v2401_v8, 0.0  ;;  %v545_v24 = vmul.f32 1.442695, %v543_v21 }
 0x2c3   :  { %308 = vadd.xlane.f32.xlu0 %v307_v10  ;;  %v542_v19 = vpop.xlane.xlu1 %541 }
 0x2c4   :  { %v544_v23 = vsub.f32 %v534_v53, %v542_v19  ;;  %2148 = vpow2.f32 %v545_v24  ;;  %v2119_v19 = vld [vmem:[#allocation2 + $0x4] ss:$24 sps:$4 sm:$0xff]  }
 0x2c5   :  { %v2143_v26 = vpop.eup %2142  ;;  %1945 = vmatpush3.bf16.msra.mxu1 %v2119_v19 }
 0x2c6   :  { %v547_v25 = vmul.f32 1.442695, %v544_v23  ;;  %v310_v28 = vsel %vm173_vm3, %v2143_v26, 0.0 }
 0x2c8   :  { %2150 = vpow2.f32 %v547_v25 }
 0x2c9   :  { %v2145_v27 = vpop.eup %2144 }
 0x2ca   :  { %v428_v32 = vsel %vm173_vm3, %v2145_v27, 0.0 }
 0x2cd   :  { %v2147_v29 = vpop.eup %2146 }
 0x2ce   :  { %v431_v31 = vsel %vm173_vm3, %v2147_v29, 0.0 }
 0x2d0   :  { %318 = vrot.lane.b32.xlu1 %v2348_v9, %s2268_s2 }
 0x2d1   :  { %v2408_v30 = vpop.eup %2148 }
 0x2d2   :  { %v549_v35 = vsel %vm173_vm3, %v2408_v30, 0.0 }
 0x2d5   :  { %v2151_v33 = vpop.eup %2150 }
 0x2d6   :  { %v552_v34 = vsel %vm173_vm3, %v2151_v33, 0.0 }
 0x2d9   :  { %197 = vrot.lane.b32.xlu0 %v2348_v9, %s2269_s25 }
 0x2f4   :  { %311 = vadd.xlane.f32.xlu1 %v310_v28 }
 0x2f8   :  { %432 = vadd.xlane.f32.xlu1 %v431_v31  ;;  %429 = vadd.xlane.f32.xlu0 %v428_v32 }
 0x2fc   :  { %553 = vadd.xlane.f32.xlu1 %v552_v34  ;;  %550 = vadd.xlane.f32.xlu0 %v549_v35 }
 0x30d   :  { %439 = vrot.lane.b32.xlu1 %v2348_v9, %s2270_s26 }
 0x312   :  { %560 = vrot.lane.b32.xlu0 %v2348_v9, %s2271_s27 }
 0x344   :  { %v188_v36 = vpop.xlane.xlu0 %187 }
 0x345   :  { %2152 = vrcp.f32 %v188_v36 }
 0x348   :  { %v191_v37 = vpop.xlane.xlu1 %190 }
 0x349   :  { %2154 = vrcp.f32 %v191_v37 }
 0x34c   :  { %v309_v38 = vpop.xlane.xlu0 %308  ;;  %v319_v45 = vpop.permute.xlu1 %318 }
 0x34d   :  { %2156 = vrcp.f32 %v309_v38 }
 0x350   :  { %v198_v39 = vpop.permute.xlu0 %197 }
 0x351   :  { %1901 = vmatpush3.bf16.msra.mxu0 %v198_v39 }
 0x352   :  { %1912 = vmatprep.subr.bf16.mxu0 %v2259_v0  ;;  %v2153_v40 = vpop.eup %2152 }
 0x353   :  { %v193_v42 = vmul.f32 %v2153_v40, %v2137_v2 }
 0x356   :  { %v2155_v41 = vpop.eup %2154 }
 0x357   :  { %v195_v43 = vmul.f32 %v2155_v41, %v2139_v6 }
 0x359   :  { %v196_v44 = vpack.c.bf16 %v195_v43, %v193_v42 }
 0x35a   :  { %v2157_v50 = vpop.eup %2156 }
 0x35b   :  { %1903 = vmatmul.mubr.msk.bf16.vlgmr.msra.gmra.mxu0 %vm173_vm3, %v196_v44  ;;  %v314_v52 = vmul.f32 %v2157_v50, %v2401_v8  ;;  %v643_v44 = vlaneseq }
 0x35c   :  { %1913 = vmatpush3.bf16.msra.mxu0 %v319_v45  ;;  %1914 = vmatprep.mubr.msk.bf16.mxu0 %vm2260_vm0, %v2259_v0 }
 0x35d   :  { %1924 = vmatprep.subr.bf16.mxu0 %v2259_v0  ;;  %v2446_v45 = vshrl.u32 %v643_v44, 7 }
 0x37d   :  { %v312_v9 = vpop.xlane.xlu1 %311 }
 0x37e   :  { %2158 = vrcp.f32 %v312_v9  ;;  %v645_v9 = vsub.s32 0, %v2446_v45 }
 0x381   :  { %v433_v46 = vpop.xlane.xlu1 %432  ;;  %v430_v47 = vpop.xlane.xlu0 %429 }
 0x382   :  { %2160 = vrcp.f32 %v433_v46  ;;  %v2452_v46 = vld [vmem:[%s2719_s6] sm:$0xff] }
 0x383   :  { %2162 = vrcp.f32 %v430_v47  ;;  %v646_v47 = vrot.slane %v2452_v46, %v645_v9 }
 0x385   :  { %v554_v48 = vpop.xlane.xlu1 %553  ;;  %v551_v49 = vpop.xlane.xlu0 %550 }
 0x386   :  { %2164 = vrcp.f32 %v554_v48 }
 0x387   :  { %2166 = vrcp.f32 %v551_v49 }
 0x389   :  { %v440_v57 = vpop.permute.xlu1 %439  ;;  %v561_v63 = vpop.permute.xlu0 %560 }
 0x38b   :  { %v2159_v51 = vpop.eup %2158 }
 0x38c   :  { %v316_v53 = vmul.f32 %v2159_v51, %v2143_v26 }
 0x38e   :  { %v317_v54 = vpack.c.bf16 %v316_v53, %v314_v52 }
 0x38f   :  { %v2161_v55 = vpop.eup %2160 }
 0x390   :  { %v2163_v56 = vpop.eup %2162  ;;  %1915 = vmatmul.mubr.msk.bf16.vlgmr.msra.gmra.mxu0 %vm173_vm3, %v317_v54  ;;  %v437_v59 = vmul.f32 %v2161_v55, %v2147_v29 }
 0x391   :  { %1925 = vmatpush3.bf16.msra.mxu0 %v440_v57  ;;  %1926 = vmatprep.mubr.msk.bf16.mxu0 %vm2260_vm0, %v2259_v0  ;;  %v435_v58 = vmul.f32 %v2163_v56, %v2145_v27 }
 0x392   :  { %1936 = vmatprep.subr.bf16.mxu0 %v2259_v0 }
 0x393   :  { %v2165_v60 = vpop.eup %2164  ;;  %v438_v61 = vpack.c.bf16 %v437_v59, %v435_v58 }
 0x394   :  { %v2167_v62 = vpop.eup %2166  ;;  %v558_v2 = vmul.f32 %v2165_v60, %v2151_v33 }
 0x395   :  { %v556_v1 = vmul.f32 %v2167_v62, %v2408_v30 }
 0x397   :  { %v559_v5 = vpack.c.bf16 %v558_v2, %v556_v1 }
 0x398   :  { %1927 = vmatmul.mubr.msk.bf16.vlgmr.msra.gmra.mxu0 %vm173_vm3, %v438_v61 }
 0x399   :  { %1937 = vmatpush3.bf16.msra.mxu0 %v561_v63  ;;  %1938 = vmatprep.mubr.msk.bf16.mxu0 %vm2260_vm0, %v2259_v0 }
 0x39a   :  { %1950 = vmatprep.subr.bf16.mxu0 %v2259_v0 }
 0x3a0   :  { %1939 = vmatmul.mubr.msk.bf16.vlgmr.msra.gmra.mxu0 %vm173_vm3, %v559_v5 }
 0x3a1   :  { %1954 = vmatprep.mubr.msk.bf16.mxu0 %vm2260_vm0, %v2259_v0 }
 0x41b   :  { %v237_v6 = vpop.f32.mrf.mxu0 }
 0x41d   :  { %v1904_v7 = vpop.f32.mrf.mxu0 }
 0x41e   :  { %v48_v7 = vld [vmem:[%s2714_s1] sm:$0xff] }
 0x41f   :  { %v240_v8 = vpop.f32.mrf.mxu0 }
 0x421   :  { %v1905_v10 = vpop.f32.mrf.mxu0 }
 0x450   :  { %v358_v11 = vpop.f32.mrf.mxu0 }
 0x452   :  { %v1916_v12 = vpop.f32.mrf.mxu0 }
 0x454   :  { %v361_v13 = vpop.f32.mrf.mxu0 }
 0x455   :  { %v2086_v15 = vpack.i.bf16 %v361_v13, %v358_v11  ;;  %v50_v11 = vld [vmem:[%s2714_s1 + $0x10] sm:$0xff] }
 0x456   :  { %v1917_v16 = vpop.f32.mrf.mxu0  ;;  %v52_v12 = vpack.c.bf16 %v50_v11, %v50_v11  ;;  %v2122_v13 = vld [vmem:[#allocation2 + $0x38] ss:$24 sps:$4 sm:$0xff]  }
 0x457   :  { %2087 = vrot.lane.b32.xlu1 %v2086_v15, %s2272_s28  ;;  %1951 = vmatpush3.bf16.msra.mxu0 %v2122_v13 }
 0x458   :  { %v479_v17 = vpop.f32.mrf.mxu0  ;;  %1952 = vmatprep.subr.bf16.mxu0 %v2259_v0 }
 0x45a   :  { %v1928_v18 = vpop.f32.mrf.mxu0 }
 0x45b   :  { %1953 = vmatpush3.bf16.msra.mxu0 %v2123_v14 }
 0x45c   :  { %v482_v20 = vpop.f32.mrf.mxu0  ;;  %1990 = vmatprep.subr.bf16.mxu0 %v2259_v0 }
 0x45d   :  { %v2091_v21 = vpack.i.bf16 %v482_v20, %v479_v17 }
 0x45e   :  { %v1929_v22 = vpop.f32.mrf.mxu0 }
 0x45f   :  { %2092 = vrot.lane.b32.xlu0 %v2091_v21, %s2273_s29  ;;  %v734_v21 = vsub.s32 1, %v2446_v45 }
 0x460   :  { %v600_v23 = vpop.f32.mrf.mxu0 }
 0x462   :  { %v1940_v24 = vpop.f32.mrf.mxu0 }
 0x463   :  { %v735_v24 = vrot.slane %v2452_v46, %v734_v21 }
 0x464   :  { %v603_v25 = vpop.f32.mrf.mxu0 }
 0x465   :  { %v2096_v26 = vpack.i.bf16 %v603_v25, %v600_v23  ;;  %v740_v25 = vsub.s32 2, %v2446_v45 }
 0x466   :  { %v1941_v27 = vpop.f32.mrf.mxu0 }
 0x467   :  { %2097 = vrot.lane.b32.xlu1 %v2096_v26, %s2258_s9 }
 0x4c9   :  { %v2088_v28 = vpop.permute.xlu1 %2087 }
 0x4ca   :  { %v2090_v30 = vunpack.i.h.bf16 %v2088_v28  ;;  %v2089_v31 = vunpack.i.l.bf16 %v2088_v28 }
 0x4cc   :  { %v632_v35 = vsel %vm125_vm2, %v240_v8, %v2090_v30  ;;  %v631_v36 = vsel %vm125_vm2, %v237_v6, %v2089_v31  ;;  %v2120_v6 = vld [vmem:[#allocation2 + $0x3c] ss:$24 sps:$4 sm:$0xff]   ;;  %v49_v8 = vld [vmem:[%s2714_s1 + $0x8] sm:$0xff] }
 0x4cd   :  { %1958 = vmatprep.subr.bf16.mxu1 %v2120_v6  ;;  %v51_v10 = vpack.c.bf16 %v49_v8, %v48_v7 }
 0x4d1   :  { %v2093_v29 = vpop.permute.xlu0 %2092 }
 0x4d2   :  { %v2095_v32 = vunpack.i.h.bf16 %v2093_v29  ;;  %v2094_v33 = vunpack.i.l.bf16 %v2093_v29  ;;  %v741_v29 = vrot.slane %v2452_v46, %v740_v25 }
 0x4d4   :  { %v634_v39 = vsel %vm173_vm3, %v632_v35, %v2095_v32  ;;  %v633_v40 = vsel %vm173_vm3, %v631_v36, %v2094_v33 }
 0x4d9   :  { %v2098_v34 = vpop.permute.xlu1 %2097 }
 0x4da   :  { %v2100_v37 = vunpack.i.h.bf16 %v2098_v34  ;;  %v2099_v38 = vunpack.i.l.bf16 %v2098_v34 }
 0x4dc   :  { %v637_v41 = vsel %vm635_vm4, %v634_v39, %v2100_v37  ;;  %v636_v42 = vsel %vm635_vm4, %v633_v40, %v2099_v38 }
 0x4dd   :  { %v638_v43 = vpack.c.bf16 %v637_v41, %v636_v42 }
 0x4df   :  { %1947 = vmatmul.mubr.msk.bf16.vlgmr.msra.gmra.mxu1 %vm76_vm1, %v638_v43 }
 0x4e0   :  { %1959 = vmatpush3.bf16.msra.mxu1 %v2120_v6  ;;  %1962 = vmatprep.mubr.msk.bf16.mxu1 %vm76_vm1, %v51_v10 }
 0x59f   :  { %v696_v48 = vpop.f32.mrf.mxu1 }
 0x5a0   :  { %v697_v49 = vadd.f32 %v696_v48, %v646_v47  ;;  %v2509_v48 = vld [vmem:[%s2716_s3] sm:$0xff] }
 0x5a1   :  { %v1948_v50 = vpop.f32.mrf.mxu1 }
 0x5a2   :  { %v703_v51 = vadd.f32 %v697_v49, %v2334_v3 }
 0x5a3   :  { %v699_v52 = vpop.f32.mrf.mxu1 }
 0x5a4   :  { %v700_v53 = vadd.f32 %v699_v52, %v646_v47  ;;  %v705_v54 = vsel %vm76_vm1, %v703_v51, 0.0  ;;  %v2515_v52 = vld [vmem:[%s2716_s3 + $0x8] sm:$0xff] }
 0x5a5   :  { %706 = vadd.xlane.f32.xlu0 %v705_v54  ;;  %v1949_v55 = vpop.f32.mrf.mxu1 }
 0x5a6   :  { %v704_v56 = vadd.f32 %v700_v53, %v2339_v4  ;;  %v2121_v4 = vld [vmem:[#allocation2 + $0xc] ss:$24 sps:$4 sm:$0xff]  }
 0x5a7   :  { %1960 = vmatprep.subr.bf16.mxu1 %v2121_v4 }
 0x5a8   :  { %v708_v57 = vsel %vm76_vm1, %v704_v56, 0.0  ;;  %1961 = vmatpush3.bf16.msra.mxu1 %v2121_v4 }
 0x5a9   :  { %709 = vadd.xlane.f32.xlu1 %v708_v57  ;;  %1966 = vmatprep.subr.bf16.mxu1 %v2259_v0 }
 0x5ab   :  { %1963 = vmatmul.mubr.msk.bf16.vlgmr.msra.gmra.mxu1 %vm76_vm1, %v52_v12 }
 0x5ac   :  { %1970 = vmatprep.mubr.msk.bf16.mxu1 %vm2260_vm0, %v2259_v0 }
 0x62e   :  { %v707_v58 = vpop.xlane.xlu0 %706 }
 0x62f   :  { %v712_v59 = vmul.f32 0.03125, %v707_v58 }
 0x631   :  { %v714_v60 = vsub.f32 %v703_v51, %v712_v59 }
 0x632   :  { %v710_v61 = vpop.xlane.xlu1 %709 }
 0x633   :  { %v713_v62 = vmul.f32 0.03125, %v710_v61  ;;  %v716_v63 = vmul.f32 %v714_v60, %v714_v60 }
 0x635   :  { %v715_v1 = vsub.f32 %v704_v56, %v713_v62  ;;  %v718_v3 = vsel %vm76_vm1, %v716_v63, 0.0 }
 0x636   :  { %719 = vadd.xlane.f32.xlu0 %v718_v3 }
 0x637   :  { %v717_v2 = vmul.f32 %v715_v1, %v715_v1 }
 0x639   :  { %v721_v5 = vsel %vm76_vm1, %v717_v2, 0.0 }
 0x63a   :  { %722 = vadd.xlane.f32.xlu0 %v721_v5 }
 0x66b   :  { %v1964_v34 = vpop.f32.mrf.mxu1 }
 0x66c   :  { %v2490_v35 = vpack.c.bf16 %v1964_v34, %v1964_v34 }
 0x66d   :  { %v861_v36 = vpop.f32.mrf.mxu1 }
 0x66e   :  { %v885_v37 = vsel %vm125_vm2, %v2490_v35, 0 }
 0x66f   :  { %1967 = vmatpush3.bf16.xpose.msra.mxu1 %v885_v37  ;;  %v1965_v38 = vpop.f32.mrf.mxu1 }
 0x670   :  { %1968 = vmatprep.subr.bf16.mxu1 %v2259_v0 }
 0x671   :  { %v864_v39 = vpop.f32.mrf.mxu1 }
 0x672   :  { %v2495_v40 = vpack.c.bf16 %v864_v39, %v861_v36 }
 0x674   :  { %v882_v41 = vsel %vm125_vm2, %v2495_v40, 0 }
 0x677   :  { %1969 = vmatpush3.bf16.xpose.msra.mxu1 %v882_v41 }
 0x678   :  { %1974 = vmatprep.subr.bf16.mxu1 %v2259_v0 }
 0x6bf   :  { %v720_v15 = vpop.xlane.xlu0 %719 }
 0x6c0   :  { %v724_v16 = vmul.f32 0.03125, %v720_v15 }
 0x6c2   :  { %v726_v17 = vadd.f32 1e-05, %v724_v16 }
 0x6c3   :  { %v723_v18 = vpop.xlane.xlu0 %722 }
 0x6c4   :  { %2168 = vrsqrt.f32 %v726_v17  ;;  %v725_v19 = vmul.f32 0.03125, %v723_v18 }
 0x6c6   :  { %v727_v20 = vadd.f32 1e-05, %v725_v19 }
 0x6c8   :  { %2170 = vrsqrt.f32 %v727_v20 }
 0x6d1   :  { %v2169_v22 = vpop.eup %2168 }
 0x6d2   :  { %v730_v23 = vmul.f32 %v2169_v22, %v714_v60 }
 0x6d4   :  { %v736_v28 = vmul.f32 %v735_v24, %v730_v23 }
 0x6d5   :  { %v2171_v26 = vpop.eup %2170 }
 0x6d6   :  { %v731_v27 = vmul.f32 %v2171_v26, %v715_v1  ;;  %v2481_v31 = vadd.f32 %v741_v29, %v736_v28 }
 0x6d8   :  { %v737_v30 = vmul.f32 %v735_v24, %v731_v27 }
 0x6da   :  { %v2483_v32 = vadd.f32 %v741_v29, %v737_v30 }
 0x6dc   :  { %v744_v33 = vpack.c.bf16 %v2483_v32, %v2481_v31 }
 0x6de   :  { %1955 = vmatmul.mubr.msk.bf16.vlgmr.msra.gmra.mxu0 %vm76_vm1, %v744_v33 }
 0x6df   :  { %1994 = vmatprep.mubr.msk.bf16.mxu0 %vm2260_vm0, %v2259_v0 }
 0x79e   :  { %v798_v42 = vpop.f32.mrf.mxu0 }
 0x7a0   :  { %v1956_v43 = vpop.f32.mrf.mxu0 }
 0x7a2   :  { %v801_v44 = vpop.f32.mrf.mxu0 }
 0x7a3   :  { %v2500_v9 = vpack.c.bf16 %v801_v44, %v798_v42 }
 0x7a4   :  { %v1957_v47 = vpop.f32.mrf.mxu0 }
 0x7a5   :  { %1971 = vmatmul.mubr.msk.bf16.vlgmr.msra.gmra.mxu1 %vm125_vm2, %v2500_v9 }
 0x7a6   :  { %1978 = vmatprep.mubr.msk.bf16.mxu1 %vm2260_vm0, %v2259_v0 }
 0x865   :  { %v921_v49 = vpop.f32.mrf.mxu1 }
 0x866   :  { %v922_v50 = vadd.f32 %v921_v49, %v2509_v48 }
 0x867   :  { %v1972_v51 = vpop.f32.mrf.mxu1 }
 0x868   :  { %v928_v53 = vsel %vm635_vm4, %v922_v50, -inf }
 0x869   :  { %929 = vmax.xlane.f32.xlu1 %v928_v53  ;;  %v924_v54 = vpop.f32.mrf.mxu1 }
 0x86a   :  { %v925_v55 = vadd.f32 %v924_v54, %v2515_v52 }
 0x86b   :  { %v1973_v56 = vpop.f32.mrf.mxu1 }
 0x86c   :  { %v931_v57 = vsel %vm635_vm4, %v925_v55, -inf }
 0x86d   :  { %932 = vmax.xlane.f32.xlu0 %v931_v57 }
 0x87a   :  { %955 = vrot.lane.b32.xlu1 %v2490_v35, %s2262_s15 }
 0x8f2   :  { %v930_v58 = vpop.xlane.xlu1 %929 }
 0x8f3   :  { %v934_v59 = vsub.f32 %v922_v50, %v930_v58 }
 0x8f5   :  { %v936_v60 = vmul.f32 1.442695, %v934_v59 }
 0x8f6   :  { %v956_v61 = vpop.permute.xlu1 %955  ;;  %v933_v62 = vpop.xlane.xlu0 %932 }
 0x8f7   :  { %2172 = vpow2.f32 %v936_v60  ;;  %v963_v63 = vsel %vm961_vm5, %v956_v61, 0  ;;  %v935_v1 = vsub.f32 %v925_v55, %v933_v62 }
 0x8f8   :  { %1975 = vmatpush3.bf16.msra.mxu1 %v963_v63 }
 0x8f9   :  { %v938_v3 = vmul.f32 1.442695, %v935_v1  ;;  %1976 = vmatprep.subr.bf16.mxu1 %v2259_v0 }
 0x8fb   :  { %2174 = vpow2.f32 %v938_v3 }
 0x904   :  { %v2173_v2 = vpop.eup %2172 }
 0x905   :  { %v940_v5 = vsel %vm635_vm4, %v2173_v2, 0.0 }
 0x906   :  { %941 = vadd.xlane.f32.xlu1 %v940_v5 }
 0x908   :  { %v2175_v6 = vpop.eup %2174 }
 0x909   :  { %v943_v4 = vsel %vm635_vm4, %v2175_v6, 0.0 }
 0x90a   :  { %944 = vadd.xlane.f32.xlu0 %v943_v4 }
 0x917   :  { %1011 = vrot.lane.b32.xlu1 %v2490_v35, %s2261_s0 }
 0x91b   :  { %1009 = vrot.lane.b32.xlu1 %v2495_v40, %s2261_s0 }
 0x920   :  { %953 = vrot.lane.b32.xlu0 %v2495_v40, %s2262_s15 }
 0x924   :  { %1007 = vrot.lane.b32.xlu0 %v2500_v9, %s2261_s0 }
 0x98f   :  { %v942_v7 = vpop.xlane.xlu1 %941 }
 0x990   :  { %2176 = vrcp.f32 %v942_v7 }
 0x993   :  { %v945_v8 = vpop.xlane.xlu0 %944  ;;  %v1012_v15 = vpop.permute.xlu1 %1011 }
 0x994   :  { %2178 = vrcp.f32 %v945_v8  ;;  %v1020_v17 = vsel %vm125_vm2, %v1012_v15, 0 }
 0x997   :  { %v954_v10 = vpop.permute.xlu0 %953  ;;  %v1010_v18 = vpop.permute.xlu1 %1009 }
 0x998   :  { %1977 = vmatpush3.bf16.msra.mxu1 %v954_v10  ;;  %v1017_v19 = vsel %vm125_vm2, %v1010_v18, 0 }
 0x999   :  { %1982 = vmatprep.subr.bf16.mxu1 %v2259_v0 }
 0x99b   :  { %v1008_v20 = vpop.permute.xlu0 %1007 }
 0x99d   :  { %v2177_v11 = vpop.eup %2176 }
 0x99e   :  { %v947_v13 = vmul.f32 %v2177_v11, %v2173_v2 }
 0x9a1   :  { %v2179_v12 = vpop.eup %2178 }
 0x9a2   :  { %v949_v14 = vmul.f32 %v2179_v12, %v2175_v6 }
 0x9a4   :  { %v950_v16 = vpack.c.bf16 %v949_v14, %v947_v13 }
 0x9a6   :  { %1979 = vmatmul.mubr.msk.bf16.vlgmr.msra.gmra.mxu1 %vm635_vm4, %v950_v16 }
 0x9a7   :  { %1983 = vmatpush3.bf16.xpose.msra.mxu1 %v1020_v17  ;;  %1986 = vmatprep.mubr.msk.bf16.mxu1 %vm2260_vm0, %v2259_v0 }
 0x9a8   :  { %1984 = vmatprep.subr.bf16.mxu1 %v2259_v0 }
 0x9af   :  { %1985 = vmatpush3.bf16.xpose.msra.mxu1 %v1017_v19 }
 0x9b0   :  { %2006 = vmatprep.subr.bf16.mxu1 %v2259_v0 }
 0x9b6   :  { %1987 = vmatmul.mubr.msk.bf16.vlgmr.msra.gmra.mxu1 %vm125_vm2, %v1008_v20 }
 0x9b7   :  { %2010 = vmatprep.mubr.msk.bf16.mxu1 %vm2260_vm0, %v2259_v0 }
 0xa66   :  { %v2545_v21 = vpop.f32.mrf.mxu1 }
 0xa68   :  { %v1980_v22 = vpop.f32.mrf.mxu1 }
 0xa6a   :  { %v2547_v23 = vpop.f32.mrf.mxu1 }
 0xa6c   :  { %v1981_v24 = vpop.f32.mrf.mxu1 }
 0xa76   :  { %v1056_v25 = vpop.f32.mrf.mxu1 }
 0xa77   :  { %v1057_v26 = vadd.f32 %v1056_v25, %v2509_v48 }
 0xa78   :  { %v1988_v27 = vpop.f32.mrf.mxu1 }
 0xa79   :  { %v1063_v28 = vsel %vm635_vm4, %v1057_v26, -inf }
 0xa7a   :  { %1064 = vmax.xlane.f32.xlu1 %v1063_v28  ;;  %v1059_v29 = vpop.f32.mrf.mxu1 }
 0xa7b   :  { %v1060_v30 = vadd.f32 %v1059_v29, %v2515_v52 }
 0xa7c   :  { %v1989_v33 = vpop.f32.mrf.mxu1 }
 0xa7d   :  { %v1066_v34 = vsel %vm635_vm4, %v1060_v30, -inf }
 0xa7e   :  { %1067 = vmax.xlane.f32.xlu0 %v1066_v34 }
 0xa8b   :  { %1086 = vrot.lane.b32.xlu1 %v2495_v40, %s2264_s17 }
 0xb03   :  { %v1065_v36 = vpop.xlane.xlu1 %1064 }
 0xb04   :  { %v1069_v37 = vsub.f32 %v1057_v26, %v1065_v36 }
 0xb06   :  { %v1071_v38 = vmul.f32 1.442695, %v1069_v37 }
 0xb07   :  { %v1068_v39 = vpop.xlane.xlu0 %1067  ;;  %v1087_v50 = vpop.permute.xlu1 %1086 }
 0xb08   :  { %2180 = vpow2.f32 %v1071_v38  ;;  %v1070_v41 = vsub.f32 %v1060_v30, %v1068_v39 }
 0xb0a   :  { %v1073_v42 = vmul.f32 1.442695, %v1070_v41 }
 0xb0c   :  { %2182 = vpow2.f32 %v1073_v42 }
 0xb15   :  { %v2181_v43 = vpop.eup %2180 }
 0xb16   :  { %v1075_v44 = vsel %vm635_vm4, %v2181_v43, 0.0 }
 0xb17   :  { %1076 = vadd.xlane.f32.xlu0 %v1075_v44 }
 0xb19   :  { %v2183_v47 = vpop.eup %2182 }
 0xb1a   :  { %v1078_v49 = vsel %vm635_vm4, %v2183_v47, 0.0 }
 0xb1b   :  { %1079 = vadd.xlane.f32.xlu1 %v1078_v49 }
 0xb2c   :  { %1142 = vrot.lane.b32.xlu1 %v2490_v35, %s2266_s19 }
 0xb2d   :  { %1088 = vrot.lane.b32.xlu0 %v2490_v35, %s2264_s17 }
 0xb30   :  { %1138 = vrot.lane.b32.xlu1 %v2500_v9, %s2266_s19 }
 0xb31   :  { %1140 = vrot.lane.b32.xlu0 %v2495_v40, %s2266_s19 }
 0xba0   :  { %v1077_v51 = vpop.xlane.xlu0 %1076 }
 0xba1   :  { %2184 = vrcp.f32 %v1077_v51 }
 0xba4   :  { %v1080_v53 = vpop.xlane.xlu1 %1079  ;;  %v1089_v54 = vpop.permute.xlu0 %1088 }
 0xba5   :  { %2186 = vrcp.f32 %v1080_v53  ;;  %v1095_v55 = vsel %vm961_vm5, %v1089_v54, 0 }
 0xba6   :  { %1991 = vmatpush3.bf16.msra.mxu0 %v1095_v55 }
 0xba7   :  { %1992 = vmatprep.subr.bf16.mxu0 %v2259_v0 }
 0xba8   :  { %v1143_v60 = vpop.permute.xlu1 %1142  ;;  %v1141_v63 = vpop.permute.xlu0 %1140 }
 0xba9   :  { %v1151_v62 = vsel %vm125_vm2, %v1143_v60, 0  ;;  %v1148_v1 = vsel %vm125_vm2, %v1141_v63, 0 }
 0xbaa   :  { %1993 = vmatpush3.bf16.msra.mxu0 %v1087_v50 }
 0xbab   :  { %1998 = vmatprep.subr.bf16.mxu0 %v2259_v0 }
 0xbac   :  { %v1139_v3 = vpop.permute.xlu1 %1138 }
 0xbae   :  { %v2185_v56 = vpop.eup %2184 }
 0xbaf   :  { %v1082_v58 = vmul.f32 %v2185_v56, %v2181_v43 }
 0xbb2   :  { %v2187_v57 = vpop.eup %2186 }
 0xbb3   :  { %v1084_v59 = vmul.f32 %v2187_v57, %v2183_v47 }
 0xbb5   :  { %v1085_v61 = vpack.c.bf16 %v1084_v59, %v1082_v58 }
 0xbb7   :  { %1995 = vmatmul.mubr.msk.bf16.vlgmr.msra.gmra.mxu0 %vm635_vm4, %v1085_v61 }
 0xbb8   :  { %1999 = vmatpush3.bf16.xpose.msra.mxu0 %v1151_v62  ;;  %2002 = vmatprep.mubr.msk.bf16.mxu0 %vm2260_vm0, %v2259_v0 }
 0xbb9   :  { %2000 = vmatprep.subr.bf16.mxu0 %v2259_v0 }
 0xbc0   :  { %2001 = vmatpush3.bf16.xpose.msra.mxu0 %v1148_v1 }
 0xbc1   :  { %2022 = vmatprep.subr.bf16.mxu0 %v2259_v0 }
 0xbc7   :  { %2003 = vmatmul.mubr.msk.bf16.vlgmr.msra.gmra.mxu0 %vm125_vm2, %v1139_v3 }
 0xbc8   :  { %2026 = vmatprep.mubr.msk.bf16.mxu0 %vm2260_vm0, %v2259_v0 }
 0xc77   :  { %v2578_v2 = vpop.f32.mrf.mxu0 }
 0xc79   :  { %v1996_v5 = vpop.f32.mrf.mxu0 }
 0xc7b   :  { %v2580_v6 = vpop.f32.mrf.mxu0 }
 0xc7c   :  { %v2101_v4 = vpack.i.bf16 %v2580_v6, %v2578_v2 }
 0xc7d   :  { %v1997_v7 = vpop.f32.mrf.mxu0 }
 0xc87   :  { %v1187_v8 = vpop.f32.mrf.mxu0 }
 0xc88   :  { %v1188_v10 = vadd.f32 %v1187_v8, %v2509_v48 }
 0xc89   :  { %v2004_v11 = vpop.f32.mrf.mxu0 }
 0xc8a   :  { %v1194_v12 = vsel %vm635_vm4, %v1188_v10, -inf }
 0xc8b   :  { %1195 = vmax.xlane.f32.xlu0 %v1194_v12  ;;  %v1190_v13 = vpop.f32.mrf.mxu0 }
 0xc8c   :  { %v1191_v14 = vadd.f32 %v1190_v13, %v2515_v52 }
 0xc8d   :  { %v2005_v15 = vpop.f32.mrf.mxu0 }
 0xc8e   :  { %v1197_v16 = vsel %vm635_vm4, %v1191_v14, -inf }
 0xc8f   :  { %1198 = vmax.xlane.f32.xlu1 %v1197_v16 }
 0xca0   :  { %1219 = vrot.lane.b32.xlu1 %v2490_v35, %s2263_s16 }
 0xca4   :  { %1273 = vrot.lane.b32.xlu1 %v2490_v35, %s2267_s20 }
 0xca8   :  { %1271 = vrot.lane.b32.xlu1 %v2495_v40, %s2267_s20 }
 0xd14   :  { %v1196_v17 = vpop.xlane.xlu0 %1195 }
 0xd15   :  { %v1200_v18 = vsub.f32 %v1188_v10, %v1196_v17 }
 0xd17   :  { %v1202_v19 = vmul.f32 1.442695, %v1200_v18  ;;  %v2124_v18 = vld [vmem:[#allocation2 + $0x40] ss:$24 sps:$4 sm:$0xff]  }
 0xd18   :  { %v1199_v20 = vpop.xlane.xlu1 %1198 }
 0xd19   :  { %2188 = vpow2.f32 %v1202_v19  ;;  %v1201_v22 = vsub.f32 %v1191_v14, %v1199_v20  ;;  %v2125_v19 = vld [vmem:[#allocation2 + $0x10] ss:$24 sps:$4 sm:$0xff]  }
 0xd1b   :  { %v1204_v24 = vmul.f32 1.442695, %v1201_v22 }
 0xd1c   :  { %v1220_v25 = vpop.permute.xlu1 %1219 }
 0xd1d   :  { %2190 = vpow2.f32 %v1204_v24  ;;  %v1226_v26 = vsel %vm961_vm5, %v1220_v25, 0 }
 0xd1e   :  { %2007 = vmatpush3.bf16.msra.mxu1 %v1226_v26 }
 0xd1f   :  { %2008 = vmatprep.subr.bf16.mxu1 %v2259_v0 }
 0xd20   :  { %v1274_v42 = vpop.permute.xlu1 %1273 }
 0xd21   :  { %v1282_v44 = vsel %vm125_vm2, %v1274_v42, 0 }
 0xd26   :  { %v2189_v27 = vpop.eup %2188 }
 0xd27   :  { %v1206_v28 = vsel %vm635_vm4, %v2189_v27, 0.0 }
 0xd28   :  { %1207 = vadd.xlane.f32.xlu0 %v1206_v28 }
 0xd2a   :  { %v2191_v29 = vpop.eup %2190 }
 0xd2b   :  { %v1209_v30 = vsel %vm635_vm4, %v2191_v29, 0.0 }
 0xd2c   :  { %1210 = vadd.xlane.f32.xlu0 %v1209_v30 }
 0xd42   :  { %1217 = vrot.lane.b32.xlu0 %v2495_v40, %s2263_s16 }
 0xd46   :  { %1269 = vrot.lane.b32.xlu0 %v2500_v9, %s2267_s20  ;;  %v1272_v9 = vpop.permute.xlu1 %1271 }
 0xd47   :  { %v1279_v47 = vsel %vm125_vm2, %v1272_v9, 0 }
 0xdb1   :  { %v1208_v33 = vpop.xlane.xlu0 %1207 }
 0xdb2   :  { %2192 = vrcp.f32 %v1208_v33 }
 0xdb5   :  { %v1211_v34 = vpop.xlane.xlu0 %1210 }
 0xdb6   :  { %2194 = vrcp.f32 %v1211_v34 }
 0xdb9   :  { %v1218_v36 = vpop.permute.xlu0 %1217 }
 0xdba   :  { %2009 = vmatpush3.bf16.msra.mxu1 %v1218_v36 }
 0xdbb   :  { %2014 = vmatprep.subr.bf16.mxu1 %v2259_v0 }
 0xdbd   :  { %v1270_v49 = vpop.permute.xlu0 %1269 }
 0xdbf   :  { %v2193_v37 = vpop.eup %2192 }
 0xdc0   :  { %v1213_v39 = vmul.f32 %v2193_v37, %v2189_v27 }
 0xdc3   :  { %v2195_v38 = vpop.eup %2194 }
 0xdc4   :  { %v1215_v41 = vmul.f32 %v2195_v38, %v2191_v29 }
 0xdc6   :  { %v1216_v43 = vpack.c.bf16 %v1215_v41, %v1213_v39 }
 0xdc8   :  { %2011 = vmatmul.mubr.msk.bf16.vlgmr.msra.gmra.mxu1 %vm635_vm4, %v1216_v43 }
 0xdc9   :  { %2015 = vmatpush3.bf16.xpose.msra.mxu1 %v1282_v44  ;;  %2018 = vmatprep.mubr.msk.bf16.mxu1 %vm2260_vm0, %v2259_v0 }
 0xdca   :  { %2016 = vmatprep.subr.bf16.mxu1 %v2259_v0 }
 0xdd1   :  { %2017 = vmatpush3.bf16.xpose.msra.mxu1 %v1279_v47 }
 0xdd2   :  { %2038 = vmatprep.subr.bf16.mxu1 %v2259_v0 }
 0xdd8   :  { %2019 = vmatmul.mubr.msk.bf16.vlgmr.msra.gmra.mxu1 %vm125_vm2, %v1270_v49 }
 0xdd9   :  { %2042 = vmatprep.mubr.msk.bf16.mxu1 %vm2260_vm0, %v2259_v0 }
 0xe88   :  { %v1262_v50 = vpop.f32.mrf.mxu1 }
 0xe8a   :  { %v2012_v51 = vpop.f32.mrf.mxu1 }
 0xe8c   :  { %v1265_v53 = vpop.f32.mrf.mxu1 }
 0xe8d   :  { %v2106_v54 = vpack.i.bf16 %v1265_v53, %v1262_v50 }
 0xe8e   :  { %v2013_v55 = vpop.f32.mrf.mxu1 }
 0xe98   :  { %v1318_v56 = vpop.f32.mrf.mxu1 }
 0xe99   :  { %v1319_v57 = vadd.f32 %v1318_v56, %v2509_v48 }
 0xe9a   :  { %v2020_v58 = vpop.f32.mrf.mxu1 }
 0xe9b   :  { %v1325_v59 = vsel %vm635_vm4, %v1319_v57, -inf }
 0xe9c   :  { %1326 = vmax.xlane.f32.xlu1 %v1325_v59  ;;  %v1321_v60 = vpop.f32.mrf.mxu1 }
 0xe9d   :  { %v1322_v61 = vadd.f32 %v1321_v60, %v2515_v52 }
 0xe9e   :  { %v2021_v62 = vpop.f32.mrf.mxu1 }
 0xe9f   :  { %v1328_v63 = vsel %vm635_vm4, %v1322_v61, -inf }
 0xea0   :  { %1329 = vmax.xlane.f32.xlu0 %v1328_v63 }
 0xf25   :  { %v1327_v1 = vpop.xlane.xlu1 %1326 }
 0xf26   :  { %v1331_v3 = vsub.f32 %v1319_v57, %v1327_v1 }
 0xf28   :  { %v1333_v5 = vmul.f32 1.442695, %v1331_v3 }
 0xf29   :  { %v1330_v7 = vpop.xlane.xlu0 %1329 }
 0xf2a   :  { %2196 = vpow2.f32 %v1333_v5  ;;  %v1332_v8 = vsub.f32 %v1322_v61, %v1330_v7 }
 0xf2c   :  { %v1335_v10 = vmul.f32 1.442695, %v1332_v8 }
 0xf2e   :  { %2198 = vpow2.f32 %v1335_v10  ;;  %v2126_v10 = vld [vmem:[#allocation2 + $0x44] ss:$24 sps:$4 sm:$0xff]  }
 0xf2f   :  { %2039 = vmatpush3.bf16.msra.mxu1 %v2126_v10 }
 0xf30   :  { %2040 = vmatprep.subr.bf16.mxu1 %v2259_v0 }
 0xf37   :  { %v2197_v48 = vpop.eup %2196 }
 0xf38   :  { %v1337_v11 = vsel %vm635_vm4, %v2197_v48, 0.0 }
 0xf39   :  { %1338 = vadd.xlane.f32.xlu0 %v1337_v11  ;;  %v2129_v11 = vld [vmem:[%s2718_s5 + $0x30] sm:$0xff]  }
 0xf3b   :  { %v2199_v12 = vpop.eup %2198 }
 0xf3c   :  { %v1340_v13 = vsel %vm635_vm4, %v2199_v12, 0.0 }
 0xf3d   :  { %1341 = vadd.xlane.f32.xlu1 %v1340_v13  ;;  %v2131_v13 = vld [vmem:[%s2718_s5 + $0x20] sm:$0xff]  }
 0xf4e   :  { %1348 = vrot.lane.b32.xlu1 %v2495_v40, %s2265_s18 }
 0xf4f   :  { %1350 = vrot.lane.b32.xlu0 %v2490_v35, %s2265_s18 }
 0xf52   :  { %2102 = vrot.lane.b32.xlu1 %v2101_v4, %s2272_s28 }
 0xf53   :  { %2107 = vrot.lane.b32.xlu0 %v2106_v54, %s2273_s29 }
 0xfc2   :  { %v1339_v52 = vpop.xlane.xlu0 %1338 }
 0xfc3   :  { %2200 = vrcp.f32 %v1339_v52  ;;  %v2132_v52 = vld [vmem:[%s2718_s5 + $0x18] sm:$0xff]  }
 0xfc6   :  { %v1342_v14 = vpop.xlane.xlu1 %1341  ;;  %v1351_v15 = vpop.permute.xlu0 %1350 }
 0xfc7   :  { %2202 = vrcp.f32 %v1342_v14  ;;  %v1357_v16 = vsel %vm961_vm5, %v1351_v15, 0 }
 0xfc8   :  { %2023 = vmatpush3.bf16.msra.mxu0 %v1357_v16 }
 0xfc9   :  { %2024 = vmatprep.subr.bf16.mxu0 %v2259_v0 }
 0xfca   :  { %v1349_v40 = vpop.permute.xlu1 %1348  ;;  %v2108_v30 = vpop.permute.xlu0 %2107 }
 0xfcb   :  { %v2110_v36 = vunpack.i.h.bf16 %v2108_v30  ;;  %v2109_v37 = vunpack.i.l.bf16 %v2108_v30  ;;  %v2133_v30 = vld [vmem:[%s2718_s5 + $0x10] sm:$0xff]  }
 0xfcc   :  { %2025 = vmatpush3.bf16.msra.mxu0 %v1349_v40 }
 0xfcd   :  { %2030 = vmatprep.subr.bf16.mxu0 %v2259_v0 }
 0xfce   :  { %v2103_v27 = vpop.permute.xlu1 %2102 }
 0xfcf   :  { %v2105_v28 = vunpack.i.h.bf16 %v2103_v27  ;;  %v2104_v29 = vunpack.i.l.bf16 %v2103_v27 }
 0xfd0   :  { %v2201_v35 = vpop.eup %2200 }
 0xfd1   :  { %v1344_v2 = vmul.f32 %v2201_v35, %v2197_v48  ;;  %v1425_v33 = vsel %vm125_vm2, %v2547_v23, %v2105_v28  ;;  %v1424_v34 = vsel %vm125_vm2, %v2545_v21, %v2104_v29  ;;  %v1437_v21 = vsub.s32 3, %v2446_v45  ;;  %v2128_v48 = vld [vmem:[%s2718_s5 + $0x38] sm:$0xff]  }
 0xfd2   :  { %v1426_v42 = vsel %vm173_vm3, %v1424_v34, %v2109_v37  ;;  %v1427_v43 = vsel %vm173_vm3, %v1425_v33, %v2110_v36  ;;  %v2134_v33 = vld [vmem:[%s2718_s5 + $0x8] sm:$0xff]   ;;  %v2135_v34 = vld [vmem:[%s2718_s5] sm:$0xff]  }
 0xfd3   :  { %v1438_v23 = vrot.slane %v2452_v46, %v1437_v21  ;;  %v1805_v36 = vld [vmem:[%s2720_s7] ss:$0 sm:$0xff] }
 0xfd4   :  { %v2203_v17 = vpop.eup %2202 }
 0xfd5   :  { %v1346_v6 = vmul.f32 %v2203_v17, %v2199_v12  ;;  %v2130_v12 = vld [vmem:[%s2718_s5 + $0x28] sm:$0xff]  }
 0xfd7   :  { %v1347_v4 = vpack.c.bf16 %v1346_v6, %v1344_v2  ;;  %v1525_v2 = vsub.s32 4, %v2446_v45 }
 0xfd9   :  { %2027 = vmatmul.mubr.msk.bf16.vlgmr.msra.gmra.mxu0 %vm635_vm4, %v1347_v4 }
 0xfda   :  { %2034 = vmatprep.mubr.msk.bf16.mxu0 %vm2260_vm0, %v2259_v0  ;;  %2031 = vmatpush3.bf16.msra.mxu0 %v2124_v18  ;;  %v1526_v18 = vrot.slane %v2452_v46, %v1525_v2 }
 0xfdb   :  { %2032 = vmatprep.subr.bf16.mxu0 %v2259_v0 }
 0xfde   :  { %2033 = vmatpush3.bf16.msra.mxu0 %v2125_v19  ;;  %v1531_v19 = vsub.s32 5, %v2446_v45 }
 0xfdf   :  { %2046 = vmatprep.subr.bf16.mxu0 %v2259_v0 }
0x1099   :  { %v1393_v20 = vpop.f32.mrf.mxu0 }
0x109b   :  { %v2028_v22 = vpop.f32.mrf.mxu0 }
0x109d   :  { %v1396_v24 = vpop.f32.mrf.mxu0 }
0x109e   :  { %v2111_v25 = vpack.i.bf16 %v1396_v24, %v1393_v20 }
0x109f   :  { %v2029_v26 = vpop.f32.mrf.mxu0 }
0x10a0   :  { %2112 = vrot.lane.b32.xlu1 %v2111_v25, %s2258_s9  ;;  %v1532_v25 = vrot.slane %v2452_v46, %v1531_v19 }
0x1112   :  { %v2113_v38 = vpop.permute.xlu1 %2112 }
0x1113   :  { %v2115_v39 = vunpack.i.h.bf16 %v2113_v38  ;;  %v2114_v41 = vunpack.i.l.bf16 %v2113_v38 }
0x1115   :  { %v1429_v44 = vsel %vm635_vm4, %v1427_v43, %v2115_v39  ;;  %v1428_v9 = vsel %vm635_vm4, %v1426_v42, %v2114_v41 }
0x1116   :  { %v1430_v47 = vpack.c.bf16 %v1429_v44, %v1428_v9 }
0x1118   :  { %2035 = vmatmul.mubr.msk.bf16.vlgmr.msra.gmra.mxu0 %vm76_vm1, %v1430_v47 }
0x1119   :  { %2062 = vmatprep.mubr.msk.bf16.mxu0 %vm2260_vm0, %v2259_v0  ;;  %2047 = vmatpush3.bf16.msra.mxu0 %v2128_v48 }
0x111a   :  { %2048 = vmatprep.subr.bf16.mxu0 %v2259_v0 }
0x111d   :  { %2049 = vmatpush3.bf16.msra.mxu0 %v2129_v11 }
0x111e   :  { %2050 = vmatprep.subr.bf16.mxu0 %v2259_v0 }
0x1121   :  { %2051 = vmatpush3.bf16.msra.mxu0 %v2130_v12 }
0x1122   :  { %2052 = vmatprep.subr.bf16.mxu0 %v2259_v0 }
0x1125   :  { %2053 = vmatpush3.bf16.msra.mxu0 %v2131_v13  ;;  %v1744_v13 = vsub.s32 7, %v2446_v45 }
0x1126   :  { %2054 = vmatprep.subr.bf16.mxu0 %v2259_v0 }
0x1129   :  { %2055 = vmatpush3.bf16.msra.mxu0 %v2132_v52  ;;  %v1745_v52 = vrot.slane %v2452_v46, %v1744_v13 }
0x112a   :  { %2056 = vmatprep.subr.bf16.mxu0 %v2259_v0 }
0x112d   :  { %2057 = vmatpush3.bf16.msra.mxu0 %v2133_v30 }
0x112e   :  { %2058 = vmatprep.subr.bf16.mxu0 %v2259_v0 }
0x1131   :  { %2059 = vmatpush3.bf16.msra.mxu0 %v2134_v33 }
0x1132   :  { %2060 = vmatprep.subr.bf16.mxu0 %v2259_v0  ;;  %v1623_v0 = vsub.s32 6, %v2446_v45 }
0x1134   :  { %v1624_v21 = vrot.slane %v2452_v46, %v1623_v0 }
0x1135   :  { %2061 = vmatpush3.bf16.msra.mxu0 %v2135_v34 }
0x11d8   :  { %v1488_v49 = vpop.f32.mrf.mxu0 }
0x11d9   :  { %v1489_v50 = vadd.f32 %v1488_v49, %v1438_v23 }
0x11da   :  { %v2036_v51 = vpop.f32.mrf.mxu0 }
0x11db   :  { %v1495_v53 = vadd.f32 %v1489_v50, %v2481_v31 }
0x11dc   :  { %v1491_v54 = vpop.f32.mrf.mxu0 }
0x11dd   :  { %v1492_v55 = vadd.f32 %v1491_v54, %v1438_v23  ;;  %v1497_v56 = vsel %vm76_vm1, %v1495_v53, 0.0 }
0x11de   :  { %1498 = vadd.xlane.f32.xlu0 %v1497_v56  ;;  %v2037_v57 = vpop.f32.mrf.mxu0 }
0x11df   :  { %v1496_v58 = vadd.f32 %v1492_v55, %v2483_v32  ;;  %v2127_v32 = vld [vmem:[#allocation2 + $0x14] ss:$24 sps:$4 sm:$0xff]  }
0x11e0   :  { %2041 = vmatpush3.bf16.msra.mxu1 %v2127_v32 }
0x11e1   :  { %v1500_v59 = vsel %vm76_vm1, %v1496_v58, 0.0 }
0x11e2   :  { %1501 = vadd.xlane.f32.xlu1 %v1500_v59 }
0x1267   :  { %v1499_v60 = vpop.xlane.xlu0 %1498 }
0x1268   :  { %v1503_v61 = vmul.f32 0.03125, %v1499_v60 }
0x126a   :  { %v1505_v62 = vsub.f32 %v1495_v53, %v1503_v61 }
0x126b   :  { %v1502_v63 = vpop.xlane.xlu1 %1501 }
0x126c   :  { %v1504_v1 = vmul.f32 0.03125, %v1502_v63  ;;  %v1507_v3 = vmul.f32 %v1505_v62, %v1505_v62 }
0x126e   :  { %v1506_v5 = vsub.f32 %v1496_v58, %v1504_v1  ;;  %v1509_v31 = vsel %vm76_vm1, %v1507_v3, 0.0 }
0x126f   :  { %1510 = vadd.xlane.f32.xlu0 %v1509_v31 }
0x1270   :  { %v1508_v7 = vmul.f32 %v1506_v5, %v1506_v5 }
0x1272   :  { %v1512_v8 = vsel %vm76_vm1, %v1508_v7, 0.0 }
0x1273   :  { %1513 = vadd.xlane.f32.xlu0 %v1512_v8 }
0x12f8   :  { %v1511_v14 = vpop.xlane.xlu0 %1510 }
0x12f9   :  { %v1515_v15 = vmul.f32 0.03125, %v1511_v14 }
0x12fb   :  { %v1517_v16 = vadd.f32 1e-05, %v1515_v15 }
0x12fc   :  { %v1514_v40 = vpop.xlane.xlu0 %1513 }
0x12fd   :  { %2204 = vrsqrt.f32 %v1517_v16  ;;  %v1516_v35 = vmul.f32 0.03125, %v1514_v40  ;;  %v1817_v16 = vld [vmem:[%s2719_s6 + $0x8] ss:$0 sm:$0xff] }
0x12ff   :  { %v1518_v17 = vadd.f32 1e-05, %v1516_v35 }
0x1301   :  { %2206 = vrsqrt.f32 %v1518_v17 }
0x130a   :  { %v2205_v6 = vpop.eup %2204 }
0x130b   :  { %v1521_v4 = vmul.f32 %v2205_v6, %v1505_v62 }
0x130d   :  { %v1527_v24 = vmul.f32 %v1526_v18, %v1521_v4 }
0x130e   :  { %v2207_v20 = vpop.eup %2206 }
0x130f   :  { %v1522_v22 = vmul.f32 %v2207_v20, %v1506_v5  ;;  %v1533_v27 = vadd.f32 %v1532_v25, %v1527_v24 }
0x1311   :  { %v1528_v26 = vmul.f32 %v1526_v18, %v1522_v22 }
0x1313   :  { %v1534_v28 = vadd.f32 %v1532_v25, %v1528_v26 }
0x1315   :  { %v1535_v29 = vpack.c.bf16 %v1534_v28, %v1533_v27 }
0x1317   :  { %2043 = vmatmul.mubr.msk.bf16.vlgmr.msra.gmra.mxu1 %vm76_vm1, %v1535_v29 }
0x13d7   :  { %v1595_v37 = vpop.f32.mrf.mxu1 }
0x13d8   :  { %v1596_v39 = vadd.f32 %v1805_v36, %v1595_v37 }
0x13d9   :  { %v2044_v38 = vpop.f32.mrf.mxu1 }
0x13da   :  { %v1602_v44 = vmax.f32 %v1596_v39, 0.0 }
0x13db   :  { %v1598_v41 = vpop.f32.mrf.mxu1 }
0x13dc   :  { %v1599_v42 = vadd.f32 %v1805_v36, %v1598_v41 }
0x13dd   :  { %v2045_v43 = vpop.f32.mrf.mxu1 }
0x13de   :  { %v1603_v9 = vmax.f32 %v1599_v42, 0.0 }
0x13e0   :  { %v1604_v47 = vpack.c.bf16 %v1603_v9, %v1602_v44 }
0x13e2   :  { %2063 = vmatmul.mubr.bf16.vlgmr.msra.gmra.mxu0 %v1604_v47 }
0x14a2   :  { %v1707_v23 = vpop.f32.mrf.mxu0 }
0x14a3   :  { %v1708_v49 = vadd.f32 %v1707_v23, %v1624_v21 }
0x14a4   :  { %v2064_v50 = vpop.f32.mrf.mxu0 }
0x14a5   :  { %v1714_v51 = vadd.f32 %v1708_v49, %v1533_v27 }
0x14a6   :  { %v1710_v53 = vpop.f32.mrf.mxu0 }
0x14a7   :  { %v1711_v54 = vadd.f32 %v1710_v53, %v1624_v21  ;;  %v1716_v55 = vsel %vm76_vm1, %v1714_v51, 0.0 }
0x14a8   :  { %1717 = vadd.xlane.f32.xlu1 %v1716_v55  ;;  %v2065_v56 = vpop.f32.mrf.mxu0 }
0x14a9   :  { %v1715_v57 = vadd.f32 %v1711_v54, %v1534_v28 }
0x14ab   :  { %v1719_v58 = vsel %vm76_vm1, %v1715_v57, 0.0 }
0x14ac   :  { %1720 = vadd.xlane.f32.xlu0 %v1719_v58 }
0x1531   :  { %v1718_v59 = vpop.xlane.xlu1 %1717 }
0x1532   :  { %v1722_v60 = vmul.f32 0.03125, %v1718_v59 }
0x1534   :  { %v1724_v61 = vsub.f32 %v1714_v51, %v1722_v60 }
0x1535   :  { %v1721_v62 = vpop.xlane.xlu0 %1720 }
0x1536   :  { %v1723_v63 = vmul.f32 0.03125, %v1721_v62  ;;  %v1726_v1 = vmul.f32 %v1724_v61, %v1724_v61 }
0x1538   :  { %v1725_v3 = vsub.f32 %v1715_v57, %v1723_v63  ;;  %v1728_v5 = vsel %vm76_vm1, %v1726_v1, 0.0 }
0x1539   :  { %1729 = vadd.xlane.f32.xlu1 %v1728_v5 }
0x153a   :  { %v1727_v31 = vmul.f32 %v1725_v3, %v1725_v3 }
0x153c   :  { %v1731_v7 = vsel %vm76_vm1, %v1727_v31, 0.0 }
0x153d   :  { %1732 = vadd.xlane.f32.xlu0 %v1731_v7 }
0x15c2   :  { %v1730_v8 = vpop.xlane.xlu1 %1729 }
0x15c3   :  { %v1734_v10 = vmul.f32 0.03125, %v1730_v8 }
0x15c5   :  { %v1736_v32 = vadd.f32 1e-05, %v1734_v10 }
0x15c6   :  { %v1733_v48 = vpop.xlane.xlu0 %1732 }
0x15c7   :  { %2208 = vrsqrt.f32 %v1736_v32  ;;  %v1735_v11 = vmul.f32 0.03125, %v1733_v48 }
0x15c9   :  { %v1737_v12 = vadd.f32 1e-05, %v1735_v11 }
0x15cb   :  { %2210 = vrsqrt.f32 %v1737_v12 }
0x15d4   :  { %v2209_v14 = vpop.eup %2208 }
0x15d5   :  { %v1740_v15 = vmul.f32 %v2209_v14, %v1724_v61 }
0x15d7   :  { %v1746_v40 = vmul.f32 %v1745_v52, %v1740_v15 }
0x15d8   :  { %v2211_v35 = vpop.eup %2210 }
0x15d9   :  { %v1741_v17 = vmul.f32 %v2211_v35, %v1725_v3  ;;  %v1752_v2 = vadd.f32 %v1817_v16, %v1746_v40 }
0x15db   :  { %v1747_v6 = vmul.f32 %v1745_v52, %v1741_v17  ;;  %1754 = vst.msk [vmem:[#allocation5] sm:$0xff] %vm76_vm1, %v1752_v2 }
0x15dd   :  { %v1753_v4 = vadd.f32 %v1817_v16, %v1747_v6 }
0x15df   :  { %1755 = vst.msk [vmem:[#allocation5 + $0x8] sm:$0xff] %vm76_vm1, %v1753_v4 }
0x15e0   :  { %2243 = shalt.err (!%p2240_p9)
}
0x15e1   :  { %s2275_s6 = smov 128  }
0x15e2   :  { %1767 = dma.vmem_to_hbm [thread:$0]  %s1762_s4, 256, %s2721_s8, [#allocation4], %s2275_s6, %s2275_s6, %s2272_s28  }
0x15e3   :  { %2254 = dma.done.wait [#allocation4], 256  }
0x15e4   :  { %2255 = vsyncadd [#allocation4], 4294967040 }
0x15e5   :  { %1771 = vsyncpa [#allocation3], 1 }
0x15e6   :  { %1772 = vsyncpa [#allocation4], 1 }

</bundles_post_ra>
